<compile_context>
chip_gen: v7x
topology: tpu7x:2x2x1
jax: 0.10.0
libtpu: 0.0.40
codegen_flags: <defaults>
</compile_context>

<pallas_src>
import functools

import jax
import jax.numpy as jnp
from jax.experimental import pallas as pl
from jax.experimental.pallas import tpu as pltpu

EPS = 1e-5
K = 7                       # Conv1d kernel size (fixed by the module)
P = (K - 1) // 2            # "same" padding = 3
CPAD = 128                  # conv2 output channels padded 80 -> 128 (lane density)
FPAD = 128                  # feature_width padded to 128 lanes
NPAD = 128                  # n_classes padded to 128 lanes
OFF = 16                    # sublane-tile-aligned pad rows around conv2's input


def _vtcnn2_kernel(lhs1_ref, w1_ref, g1_ref, b1_ref,
                   w2_ref, cb2_ref, g2_ref, b2_ref,
                   wl_ref, bl_ref, g3_ref, b3_ref,
                   wc_ref, cb_ref,
                   y_ref, feat_ref, hp2_ref):
    B = y_ref.shape[0]
    BS = lhs1_ref.shape[0]
    S = BS // B
    C2 = w2_ref.shape[1]            # 256
    O2 = w2_ref.shape[2]            # 128 (= 80 padded)

    def batchnorm(h, g, b):
        # training-mode BatchNorm1d (biased variance), two-pass (x-mu)^2 form
        inv_n = 1.0 / h.shape[0]
        mu = jnp.sum(h, axis=0, keepdims=True) * inv_n
        d = h - mu
        var = jnp.sum(d * d, axis=0, keepdims=True) * inv_n
        return d * (jax.lax.rsqrt(var + EPS) * g) + b

    # ---- Conv1d(2*Cin -> 256, k=7, same, bias=False) -> ReLU -> BN(256) ----
    # im2col LHS is prepared (and bf16-cast) in the JAX wrapper.
    h1 = jnp.dot(lhs1_ref[...], w1_ref[...], preferred_element_type=jnp.float32)
    h1 = jnp.maximum(h1, 0.0)
    h1 = batchnorm(h1, g1_ref[...], b1_ref[...])

    # ---- "same"-padded intermediate in bf16, sublane-tile-aligned stores ----
    hp2_ref[:, :OFF, :] = jnp.zeros((B, OFF, C2), jnp.bfloat16)
    hp2_ref[:, OFF + S:, :] = jnp.zeros((B, OFF, C2), jnp.bfloat16)
    hp2_ref[:, OFF:OFF + S, :] = h1.reshape(B, S, C2).astype(jnp.bfloat16)

    # ---- Conv1d(256 -> 80 (padded 128), k=7, same, bias) -> ReLU -> BN ----
    # K accumulated 256-deep MXU dots; no materialized (B*S, K*256) im2col.
    acc2 = jnp.dot(hp2_ref[:, OFF - P:OFF - P + S, :].reshape(BS, C2),
                   w2_ref[0], preferred_element_type=jnp.float32)
    for k in range(1, K):
        tap = hp2_ref[:, OFF - P + k:OFF - P + k + S, :].reshape(BS, C2)
        acc2 = acc2 + jnp.dot(tap, w2_ref[k], preferred_element_type=jnp.float32)
    h2 = jnp.maximum(acc2 + cb2_ref[...], 0.0)
    h2 = batchnorm(h2, g2_ref[...], b2_ref[...])

    # ---- Flatten -> Linear(80*S -> F) as ONE (B, S*128) x (S*128, 128) matmul ----
    # TODO(synk): at production S/F, eliminate the 80->128 zero rows in this
    # contraction (37.5% wasted MXU passes) by feeding 80-lane slices instead.
    lhs3 = h2.reshape(B, S * O2).astype(jnp.bfloat16)
    feat = jnp.dot(lhs3, wl_ref[...], preferred_element_type=jnp.float32) + bl_ref[...]
    feat = jnp.maximum(feat, 0.0)
    feat = batchnorm(feat, g3_ref[...], b3_ref[...])

    # ---- classifier: Linear(F -> n_classes), 128-lane padded output ----
    y = jnp.dot(feat.astype(jnp.bfloat16), wc_ref[...],
                preferred_element_type=jnp.float32) + cb_ref[...]

    feat_ref[...] = feat
    y_ref[...] = y


def init_params(key, input_samples, input_channels, feature_width, n_classes):
    """Deterministic synthetic parameters in torch layout, rearranged for the kernel.

    NOTE: all padded lanes (channels 80->128, F->128, n_classes->128) carry
    zero weights / bias / gamma / beta; real checkpoints must reproduce the
    same zero-padding or garbage would leak into the BN stats / Linear.
    """
    Cin = 2 * input_channels
    S = input_samples
    F = feature_width
    ks = jax.random.split(key, 13)
    nrm = lambda k, shape, s: s * jax.random.normal(k, shape, dtype=jnp.float32)

    # torch-layout parameters
    conv1_w = nrm(ks[0], (256, Cin, K), 0.10)          # Conv1d(2C->256), bias=False
    bn1_g = 1.0 + nrm(ks[1], (256,), 0.10)
    bn1_b = nrm(ks[2], (256,), 0.05)
    conv2_w = nrm(ks[3], (80, 256, K), 0.05)           # Conv1d(256->80)
    conv2_b = nrm(ks[4], (80,), 0.05)
    bn2_g = 1.0 + nrm(ks[5], (80,), 0.10)
    bn2_b = nrm(ks[6], (80,), 0.05)
    lin_w = nrm(ks[7], (F, 80 * S), 0.02)              # Linear(80*S -> F)
    lin_b = nrm(ks[8], (F,), 0.05)
    bn3_g = 1.0 + nrm(ks[9], (F,), 0.10)
    bn3_b = nrm(ks[10], (F,), 0.05)
    cls_w = nrm(ks[11], (n_classes, F), 0.10)          # Linear(F -> n_classes)
    cls_b = nrm(ks[12], (n_classes,), 0.05)

    # ---- rearrange into kernel layout (per-tap weights, 128-lane padding, bf16) ----
    # conv1: (O, C, K) -> (K, C, O) -> (K*C, O)
    w1 = jnp.transpose(conv1_w, (2, 1, 0)).reshape(K * Cin, 256).astype(jnp.bfloat16)
    g1 = bn1_g.reshape(1, 256)
    b1 = bn1_b.reshape(1, 256)
    # conv2: (O, C, K) -> (K, 256, 80), zero-pad O 80->128, kept per-tap (K, 256, 128)
    w2 = jnp.pad(jnp.transpose(conv2_w, (2, 1, 0)),
                 ((0, 0), (0, 0), (0, CPAD - 80))).astype(jnp.bfloat16)
    cb2 = jnp.pad(conv2_b, (0, CPAD - 80)).reshape(1, CPAD)
    g2 = jnp.pad(bn2_g, (0, CPAD - 80)).reshape(1, CPAD)
    b2 = jnp.pad(bn2_b, (0, CPAD - 80)).reshape(1, CPAD)
    # Linear: wl[l, c, f] = lin_w[f, c*S + l]  (torch Flatten is channel-major);
    # zero-pad c 80->128 and f F->128, then flatten (l, c).
    wl3 = jnp.transpose(lin_w.reshape(F, 80, S), (2, 1, 0))        # (S, 80, F)
    wl3 = jnp.pad(wl3, ((0, 0), (0, CPAD - 80), (0, FPAD - F)))    # (S, 128, 128)
    wl = wl3.reshape(S * CPAD, FPAD).astype(jnp.bfloat16)
    bl = jnp.pad(lin_b, (0, FPAD - F)).reshape(1, FPAD)
    g3 = jnp.pad(bn3_g, (0, FPAD - F)).reshape(1, FPAD)
    b3 = jnp.pad(bn3_b, (0, FPAD - F)).reshape(1, FPAD)
    # classifier: (n_classes, F) -> (F, n_classes) -> zero-pad to (128, 128)
    wc = jnp.pad(cls_w.T, ((0, FPAD - F), (0, NPAD - n_classes))).astype(jnp.bfloat16)
    cb = jnp.pad(cls_b, (0, NPAD - n_classes)).reshape(1, NPAD)
    return (w1, g1, b1, w2, cb2, g2, b2, wl, bl, g3, b3, wc, cb)


@functools.partial(jax.jit, static_argnums=(2, 3))
def vtcnn2_1d_forward(x_complex, params, feature_width, n_classes):
    # torch.view_as_real(x).transpose(-2,-1).flatten(1,2):
    #   (B, Cin, S) complex -> (B, 2*Cin, S) with channels [c0_re, c0_im, c1_re, ...]
    B, Cin, S = x_complex.shape
    C = 2 * Cin
    xr = jnp.stack([jnp.real(x_complex), jnp.imag(x_complex)], axis=2)  # (B, Cin, 2, S)
    x_nlc = jnp.transpose(xr.reshape(B, C, S), (0, 2, 1)).astype(jnp.float32)
    # conv1 im2col + bf16 cast done OUTSIDE the kernel: with C=4 the in-kernel
    # taps are 4-lane-sparse vregs and pure relayout overhead for a matmul
    # whose 28-deep contraction can never fill the MXU anyway.
    x_pad = jnp.pad(x_nlc, ((0, 0), (P, P), (0, 0)))                    # (B, S+2P, C)
    lhs1 = jnp.concatenate([x_pad[:, k:k + S, :] for k in range(K)], axis=-1)
    lhs1 = lhs1.reshape(B * S, K * C).astype(jnp.bfloat16)

    (w1, g1, b1, w2, cb2, g2, b2, wl, bl, g3, b3, wc, cb) = params
    operands = (lhs1, w1, g1, b1, w2, cb2, g2, b2, wl, bl, g3, b3, wc, cb)

    # advisory cost estimate so XLA schedules the wrapper glue around the call
    flops = (2 * B * S * (K * C) * 256            # conv1 im2col matmul
             + 2 * B * S * (K * 256) * CPAD       # conv2: K accumulated 256-deep dots
             + 2 * B * (S * CPAD) * FPAD          # flatten Linear
             + 2 * B * FPAD * NPAD)               # classifier
    param_bytes = int(sum(a.size * a.dtype.itemsize for a in operands))
    out_bytes = B * NPAD * 4 + B * FPAD * 4
    cost = pl.CostEstimate(flops=int(flops), transcendentals=512,
                           bytes_accessed=param_bytes + out_bytes)

    # VMEM budget re-derived for the bf16 scratch / no-im2col layout, with 2x
    # headroom; capped at 40 MiB (v7x physical VMEM is only 64 MiB and the
    # compiler needs internal scratch + pipeline-buffer headroom).
    scratch_bytes = B * (S + 2 * OFF) * 256 * 2     # bf16 padded intermediate
    act_bytes = (B * S * 256 * 4                    # h1 (f32)
                 + 2 * B * S * CPAD * 4             # conv2 acc + BN temps (f32)
                 + B * S * CPAD * 2                 # flatten LHS (bf16)
                 + B * FPAD * 4 + B * NPAD * 4)
    vmem_limit = int(min(40 * 1024 * 1024,
                         max(8 * 1024 * 1024,
                             2 * (param_bytes + out_bytes + scratch_bytes + act_bytes))))

    vmem_spec = pl.BlockSpec(memory_space=pltpu.MemorySpace.VMEM)
    y_pad, feat_pad = pl.pallas_call(
        _vtcnn2_kernel,
        out_shape=(jax.ShapeDtypeStruct((B, NPAD), jnp.float32),
                   jax.ShapeDtypeStruct((B, FPAD), jnp.float32)),
        in_specs=[vmem_spec] * 14,
        out_specs=(vmem_spec, vmem_spec),
        scratch_shapes=[pltpu.VMEM((B, S + 2 * OFF, 256), jnp.bfloat16)],
        compiler_params=pltpu.CompilerParams(vmem_limit_bytes=vmem_limit),
        cost_estimate=cost,
    )(*operands)
    # slice the lane-padded outputs back to the logical widths
    return y_pad[:, :n_classes], feat_pad[:, :feature_width]


def _reference_forward(x_complex, params, feature_width, n_classes):
    """Pure-JAX reference mirroring the kernel's bf16-at-matmul-inputs semantics."""
    (w1, g1, b1, w2, cb2, g2, b2, wl, bl, g3, b3, wc, cb) = params
    B, Cin, S = x_complex.shape
    C = 2 * Cin
    O2 = w2.shape[2]
    hi = jax.lax.Precision.HIGHEST

    def bn(h, g, b):
        mu = jnp.mean(h, axis=0, keepdims=True)
        var = jnp.mean((h - mu) ** 2, axis=0, keepdims=True)
        return (h - mu) * jax.lax.rsqrt(var + EPS) * g + b

    def rd(a):  # bf16 rounding of matmul LHS, accumulate in f32
        return a.astype(jnp.bfloat16).astype(jnp.float32)

    xr = jnp.stack([jnp.real(x_complex), jnp.imag(x_complex)], axis=2).reshape(B, C, S)
    x = jnp.transpose(xr, (0, 2, 1)).astype(jnp.float32)
    xp = jnp.pad(x, ((0, 0), (P, P), (0, 0)))

    taps1 = jnp.concatenate([xp[:, k:k + S, :] for k in range(K)], axis=-1)
    h1 = jnp.dot(rd(taps1.reshape(B * S, K * C)), w1.astype(jnp.float32), precision=hi)
    h1 = bn(jnp.maximum(h1, 0.0), g1, b1)

    h1p = jnp.pad(rd(h1).reshape(B, S, 256), ((0, 0), (P, P), (0, 0)))
    h2 = jnp.zeros((B * S, O2), jnp.float32)
    for k in range(K):
        h2 = h2 + jnp.dot(h1p[:, k:k + S, :].reshape(B * S, 256),
                          w2[k].astype(jnp.float32), precision=hi)
    h2 = bn(jnp.maximum(h2 + cb2, 0.0), g2, b2)

    feat = jnp.dot(rd(h2.reshape(B, S * O2)), wl.astype(jnp.float32), precision=hi) + bl
    feat = bn(jnp.maximum(feat, 0.0), g3, b3)
    y = jnp.dot(rd(feat), wc.astype(jnp.float32), precision=hi) + cb
    return y[:, :n_classes], feat[:, :feature_width]


if __name__ == "__main__":
    # small shapes consistent with the module
    B = 2
    input_channels = 2        # complex channels -> conv sees 2*2 = 4 real channels
    input_samples = 16
    feature_width = 32
    n_classes = 8

    key = jax.random.PRNGKey(0)
    kx, kp = jax.random.split(key)
    kxr, kxi = jax.random.split(kx)
    x = (jax.random.normal(kxr, (B, input_channels, input_samples), jnp.float32)
         + 1j * jax.random.normal(kxi, (B, input_channels, input_samples), jnp.float32))
    x = x.astype(jnp.complex64)

    params = init_params(kp, input_samples, input_channels, feature_width, n_classes)

    y, feat = vtcnn2_1d_forward(x, params, feature_width, n_classes)
    jax.block_until_ready((y, feat))

    assert y.shape == (B, n_classes) and y.dtype == jnp.float32
    assert feat.shape == (B, feature_width) and feat.dtype == jnp.float32
    assert bool(jnp.all(jnp.isfinite(y))) and bool(jnp.all(jnp.isfinite(feat)))

    # correctness vs a pure-JAX reference with matching bf16/f32 semantics
    y_ref, feat_ref = _reference_forward(x, params, feature_width, n_classes)
    assert float(jnp.max(jnp.abs(y - y_ref))) < 5e-2
    assert float(jnp.max(jnp.abs(feat - feat_ref))) < 5e-2

    print("KERNEL_OK")
</pallas_src>

<mosaic_0001>
module attributes {stable_mosaic.version = 11 : i64} {
  func.func @_vtcnn2_kernel(%arg0: memref<32x28xbf16, #tpu.memory_space<vmem>>, %arg1: memref<28x256xbf16, #tpu.memory_space<vmem>>, %arg2: memref<1x256xf32, #tpu.memory_space<vmem>>, %arg3: memref<1x256xf32, #tpu.memory_space<vmem>>, %arg4: memref<7x256x128xbf16, #tpu.memory_space<vmem>>, %arg5: memref<1x128xf32, #tpu.memory_space<vmem>>, %arg6: memref<1x128xf32, #tpu.memory_space<vmem>>, %arg7: memref<1x128xf32, #tpu.memory_space<vmem>>, %arg8: memref<2048x128xbf16, #tpu.memory_space<vmem>>, %arg9: memref<1x128xf32, #tpu.memory_space<vmem>>, %arg10: memref<1x128xf32, #tpu.memory_space<vmem>>, %arg11: memref<1x128xf32, #tpu.memory_space<vmem>>, %arg12: memref<128x128xbf16, #tpu.memory_space<vmem>>, %arg13: memref<1x128xf32, #tpu.memory_space<vmem>>, %arg14: memref<2x128xf32, #tpu.memory_space<vmem>>, %arg15: memref<2x128xf32, #tpu.memory_space<vmem>>, %arg16: memref<2x48x256xbf16, #tpu.memory_space<vmem>>) attributes {dimension_semantics = [], scalar_prefetch = 0 : i64, scratch_operands = 1 : i64, tpu.core_type = #tpu.core_type<tc>} {
    %c0 = arith.constant 0 : index
    %c0_0 = arith.constant 0 : index
    %0 = vector.load %arg0[%c0, %c0_0] : memref<32x28xbf16, #tpu.memory_space<vmem>>, vector<32x28xbf16>
    %c0_1 = arith.constant 0 : index
    %c0_2 = arith.constant 0 : index
    %1 = vector.load %arg1[%c0_1, %c0_2] : memref<28x256xbf16, #tpu.memory_space<vmem>>, vector<28x256xbf16>
    %cst = arith.constant dense<0.000000e+00> : vector<32x256xf32>
    %2 = tpu.matmul %0, %1, %cst {dimension_numbers = #tpu.dot_dimension_numbers<[1], [0], [0], [1], [0, 0, 1, 1], [], []>} : vector<32x28xbf16>, vector<28x256xbf16>, vector<32x256xf32> -> vector<32x256xf32>
    %cst_3 = arith.constant 0.000000e+00 : f32
    %3 = vector.broadcast %cst_3 : f32 to vector<32x256xf32>
    %4 = arith.maximumf %2, %3 : vector<32x256xf32>
    %c0_4 = arith.constant 0 : index
    %c0_5 = arith.constant 0 : index
    %5 = vector.load %arg2[%c0_4, %c0_5] : memref<1x256xf32, #tpu.memory_space<vmem>>, vector<1x256xf32>
    %c0_6 = arith.constant 0 : index
    %c0_7 = arith.constant 0 : index
    %6 = vector.load %arg3[%c0_6, %c0_7] : memref<1x256xf32, #tpu.memory_space<vmem>>, vector<1x256xf32>
    %cst_8 = arith.constant dense<0.000000e+00> : vector<256xf32>
    %7 = vector.multi_reduction <add>, %4, %cst_8 [0] : vector<32x256xf32> to vector<256xf32>
    %8 = vector.shape_cast %7 : vector<256xf32> to vector<1x256xf32>
    %cst_9 = arith.constant 3.125000e-02 : f32
    %9 = vector.broadcast %cst_9 : f32 to vector<1x256xf32>
    %10 = arith.mulf %8, %9 : vector<1x256xf32>
    %11 = vector.broadcast %10 : vector<1x256xf32> to vector<32x256xf32>
    %12 = arith.subf %4, %11 : vector<32x256xf32>
    %13 = arith.mulf %12, %12 : vector<32x256xf32>
    %cst_10 = arith.constant dense<0.000000e+00> : vector<256xf32>
    %14 = vector.multi_reduction <add>, %13, %cst_10 [0] : vector<32x256xf32> to vector<256xf32>
    %15 = vector.shape_cast %14 : vector<256xf32> to vector<1x256xf32>
    %cst_11 = arith.constant 3.125000e-02 : f32
    %16 = vector.broadcast %cst_11 : f32 to vector<1x256xf32>
    %17 = arith.mulf %15, %16 : vector<1x256xf32>
    %cst_12 = arith.constant 9.99999974E-6 : f32
    %18 = vector.broadcast %cst_12 : f32 to vector<1x256xf32>
    %19 = arith.addf %17, %18 : vector<1x256xf32>
    %20 = math.rsqrt %19 : vector<1x256xf32>
    %21 = arith.mulf %20, %5 : vector<1x256xf32>
    %22 = vector.broadcast %21 : vector<1x256xf32> to vector<32x256xf32>
    %23 = arith.mulf %12, %22 : vector<32x256xf32>
    %24 = vector.broadcast %6 : vector<1x256xf32> to vector<32x256xf32>
    %25 = arith.addf %23, %24 : vector<32x256xf32>
    %cst_13 = arith.constant 0.000000e+00 : bf16
    %26 = vector.broadcast %cst_13 : bf16 to vector<2x16x256xbf16>
    %c0_14 = arith.constant 0 : index
    %c0_15 = arith.constant 0 : index
    %c0_16 = arith.constant 0 : index
    %27 = vector.load %arg16[%c0_14, %c0_15, %c0_16] : memref<2x48x256xbf16, #tpu.memory_space<vmem>>, vector<2x16x256xbf16>
    tpu.vector_store %arg16[%c0_14, %c0_15, %c0_16], %26 {strides = array<i32>} : memref<2x48x256xbf16, #tpu.memory_space<vmem>>, vector<2x16x256xbf16>,
    %cst_17 = arith.constant 0.000000e+00 : bf16
    %28 = vector.broadcast %cst_17 : bf16 to vector<2x16x256xbf16>
    %c0_18 = arith.constant 0 : index
    %c32 = arith.constant 32 : index
    %c0_19 = arith.constant 0 : index
    %29 = vector.load %arg16[%c0_18, %c32, %c0_19] : memref<2x48x256xbf16, #tpu.memory_space<vmem>>, vector<2x16x256xbf16>
    tpu.vector_store %arg16[%c0_18, %c32, %c0_19], %28 {strides = array<i32>} : memref<2x48x256xbf16, #tpu.memory_space<vmem>>, vector<2x16x256xbf16>,
    %30 = vector.shape_cast %25 : vector<32x256xf32> to vector<2x16x256xf32>
    %31 = arith.truncf %30 : vector<2x16x256xf32> to vector<2x16x256xbf16>
    %c0_20 = arith.constant 0 : index
    %c16 = arith.constant 16 : index
    %c0_21 = arith.constant 0 : index
    %32 = vector.load %arg16[%c0_20, %c16, %c0_21] : memref<2x48x256xbf16, #tpu.memory_space<vmem>>, vector<2x16x256xbf16>
    tpu.vector_store %arg16[%c0_20, %c16, %c0_21], %31 {strides = array<i32>} : memref<2x48x256xbf16, #tpu.memory_space<vmem>>, vector<2x16x256xbf16>,
    %c0_22 = arith.constant 0 : index
    %c13 = arith.constant 13 : index
    %c0_23 = arith.constant 0 : index
    %33 = vector.load %arg16[%c0_22, %c13, %c0_23] : memref<2x48x256xbf16, #tpu.memory_space<vmem>>, vector<2x16x256xbf16>
    %34 = vector.shape_cast %33 : vector<2x16x256xbf16> to vector<32x256xbf16>
    %c0_24 = arith.constant 0 : index
    %c0_25 = arith.constant 0 : index
    %c0_26 = arith.constant 0 : index
    %35 = vector.load %arg4[%c0_24, %c0_25, %c0_26] : memref<7x256x128xbf16, #tpu.memory_space<vmem>>, vector<1x256x128xbf16>
    %36 = vector.shape_cast %35 : vector<1x256x128xbf16> to vector<256x128xbf16>
    %cst_27 = arith.constant dense<0.000000e+00> : vector<32x128xf32>
    %37 = tpu.matmul %34, %36, %cst_27 {dimension_numbers = #tpu.dot_dimension_numbers<[1], [0], [0], [1], [0, 0, 1, 1], [], []>} : vector<32x256xbf16>, vector<256x128xbf16>, vector<32x128xf32> -> vector<32x128xf32>
    %c0_28 = arith.constant 0 : index
    %c14 = arith.constant 14 : index
    %c0_29 = arith.constant 0 : index
    %38 = vector.load %arg16[%c0_28, %c14, %c0_29] : memref<2x48x256xbf16, #tpu.memory_space<vmem>>, vector<2x16x256xbf16>
    %39 = vector.shape_cast %38 : vector<2x16x256xbf16> to vector<32x256xbf16>
    %c1 = arith.constant 1 : index
    %c0_30 = arith.constant 0 : index
    %c0_31 = arith.constant 0 : index
    %40 = vector.load %arg4[%c1, %c0_30, %c0_31] : memref<7x256x128xbf16, #tpu.memory_space<vmem>>, vector<1x256x128xbf16>
    %41 = vector.shape_cast %40 : vector<1x256x128xbf16> to vector<256x128xbf16>
    %cst_32 = arith.constant dense<0.000000e+00> : vector<32x128xf32>
    %42 = tpu.matmul %39, %41, %cst_32 {dimension_numbers = #tpu.dot_dimension_numbers<[1], [0], [0], [1], [0, 0, 1, 1], [], []>} : vector<32x256xbf16>, vector<256x128xbf16>, vector<32x128xf32> -> vector<32x128xf32>
    %43 = arith.addf %37, %42 : vector<32x128xf32>
    %c0_33 = arith.constant 0 : index
    %c15 = arith.constant 15 : index
    %c0_34 = arith.constant 0 : index
    %44 = vector.load %arg16[%c0_33, %c15, %c0_34] : memref<2x48x256xbf16, #tpu.memory_space<vmem>>, vector<2x16x256xbf16>
    %45 = vector.shape_cast %44 : vector<2x16x256xbf16> to vector<32x256xbf16>
    %c2 = arith.constant 2 : index
    %c0_35 = arith.constant 0 : index
    %c0_36 = arith.constant 0 : index
    %46 = vector.load %arg4[%c2, %c0_35, %c0_36] : memref<7x256x128xbf16, #tpu.memory_space<vmem>>, vector<1x256x128xbf16>
    %47 = vector.shape_cast %46 : vector<1x256x128xbf16> to vector<256x128xbf16>
    %cst_37 = arith.constant dense<0.000000e+00> : vector<32x128xf32>
    %48 = tpu.matmul %45, %47, %cst_37 {dimension_numbers = #tpu.dot_dimension_numbers<[1], [0], [0], [1], [0, 0, 1, 1], [], []>} : vector<32x256xbf16>, vector<256x128xbf16>, vector<32x128xf32> -> vector<32x128xf32>
    %49 = arith.addf %43, %48 : vector<32x128xf32>
    %c0_38 = arith.constant 0 : index
    %c16_39 = arith.constant 16 : index
    %c0_40 = arith.constant 0 : index
    %50 = vector.load %arg16[%c0_38, %c16_39, %c0_40] : memref<2x48x256xbf16, #tpu.memory_space<vmem>>, vector<2x16x256xbf16>
    %51 = vector.shape_cast %50 : vector<2x16x256xbf16> to vector<32x256xbf16>
    %c3 = arith.constant 3 : index
    %c0_41 = arith.constant 0 : index
    %c0_42 = arith.constant 0 : index
    %52 = vector.load %arg4[%c3, %c0_41, %c0_42] : memref<7x256x128xbf16, #tpu.memory_space<vmem>>, vector<1x256x128xbf16>
    %53 = vector.shape_cast %52 : vector<1x256x128xbf16> to vector<256x128xbf16>
    %cst_43 = arith.constant dense<0.000000e+00> : vector<32x128xf32>
    %54 = tpu.matmul %51, %53, %cst_43 {dimension_numbers = #tpu.dot_dimension_numbers<[1], [0], [0], [1], [0, 0, 1, 1], [], []>} : vector<32x256xbf16>, vector<256x128xbf16>, vector<32x128xf32> -> vector<32x128xf32>
    %55 = arith.addf %49, %54 : vector<32x128xf32>
    %c0_44 = arith.constant 0 : index
    %c17 = arith.constant 17 : index
    %c0_45 = arith.constant 0 : index
    %56 = vector.load %arg16[%c0_44, %c17, %c0_45] : memref<2x48x256xbf16, #tpu.memory_space<vmem>>, vector<2x16x256xbf16>
    %57 = vector.shape_cast %56 : vector<2x16x256xbf16> to vector<32x256xbf16>
    %c4 = arith.constant 4 : index
    %c0_46 = arith.constant 0 : index
    %c0_47 = arith.constant 0 : index
    %58 = vector.load %arg4[%c4, %c0_46, %c0_47] : memref<7x256x128xbf16, #tpu.memory_space<vmem>>, vector<1x256x128xbf16>
    %59 = vector.shape_cast %58 : vector<1x256x128xbf16> to vector<256x128xbf16>
    %cst_48 = arith.constant dense<0.000000e+00> : vector<32x128xf32>
    %60 = tpu.matmul %57, %59, %cst_48 {dimension_numbers = #tpu.dot_dimension_numbers<[1], [0], [0], [1], [0, 0, 1, 1], [], []>} : vector<32x256xbf16>, vector<256x128xbf16>, vector<32x128xf32> -> vector<32x128xf32>
    %61 = arith.addf %55, %60 : vector<32x128xf32>
    %c0_49 = arith.constant 0 : index
    %c18 = arith.constant 18 : index
    %c0_50 = arith.constant 0 : index
    %62 = vector.load %arg16[%c0_49, %c18, %c0_50] : memref<2x48x256xbf16, #tpu.memory_space<vmem>>, vector<2x16x256xbf16>
    %63 = vector.shape_cast %62 : vector<2x16x256xbf16> to vector<32x256xbf16>
    %c5 = arith.constant 5 : index
    %c0_51 = arith.constant 0 : index
    %c0_52 = arith.constant 0 : index
    %64 = vector.load %arg4[%c5, %c0_51, %c0_52] : memref<7x256x128xbf16, #tpu.memory_space<vmem>>, vector<1x256x128xbf16>
    %65 = vector.shape_cast %64 : vector<1x256x128xbf16> to vector<256x128xbf16>
    %cst_53 = arith.constant dense<0.000000e+00> : vector<32x128xf32>
    %66 = tpu.matmul %63, %65, %cst_53 {dimension_numbers = #tpu.dot_dimension_numbers<[1], [0], [0], [1], [0, 0, 1, 1], [], []>} : vector<32x256xbf16>, vector<256x128xbf16>, vector<32x128xf32> -> vector<32x128xf32>
    %67 = arith.addf %61, %66 : vector<32x128xf32>
    %c0_54 = arith.constant 0 : index
    %c19 = arith.constant 19 : index
    %c0_55 = arith.constant 0 : index
    %68 = vector.load %arg16[%c0_54, %c19, %c0_55] : memref<2x48x256xbf16, #tpu.memory_space<vmem>>, vector<2x16x256xbf16>
    %69 = vector.shape_cast %68 : vector<2x16x256xbf16> to vector<32x256xbf16>
    %c6 = arith.constant 6 : index
    %c0_56 = arith.constant 0 : index
    %c0_57 = arith.constant 0 : index
    %70 = vector.load %arg4[%c6, %c0_56, %c0_57] : memref<7x256x128xbf16, #tpu.memory_space<vmem>>, vector<1x256x128xbf16>
    %71 = vector.shape_cast %70 : vector<1x256x128xbf16> to vector<256x128xbf16>
    %cst_58 = arith.constant dense<0.000000e+00> : vector<32x128xf32>
    %72 = tpu.matmul %69, %71, %cst_58 {dimension_numbers = #tpu.dot_dimension_numbers<[1], [0], [0], [1], [0, 0, 1, 1], [], []>} : vector<32x256xbf16>, vector<256x128xbf16>, vector<32x128xf32> -> vector<32x128xf32>
    %73 = arith.addf %67, %72 : vector<32x128xf32>
    %c0_59 = arith.constant 0 : index
    %c0_60 = arith.constant 0 : index
    %74 = vector.load %arg5[%c0_59, %c0_60] : memref<1x128xf32, #tpu.memory_space<vmem>>, vector<1x128xf32>
    %75 = vector.broadcast %74 : vector<1x128xf32> to vector<32x128xf32>
    %76 = arith.addf %73, %75 : vector<32x128xf32>
    %cst_61 = arith.constant 0.000000e+00 : f32
    %77 = vector.broadcast %cst_61 : f32 to vector<32x128xf32>
    %78 = arith.maximumf %76, %77 : vector<32x128xf32>
    %c0_62 = arith.constant 0 : index
    %c0_63 = arith.constant 0 : index
    %79 = vector.load %arg6[%c0_62, %c0_63] : memref<1x128xf32, #tpu.memory_space<vmem>>, vector<1x128xf32>
    %c0_64 = arith.constant 0 : index
    %c0_65 = arith.constant 0 : index
    %80 = vector.load %arg7[%c0_64, %c0_65] : memref<1x128xf32, #tpu.memory_space<vmem>>, vector<1x128xf32>
    %cst_66 = arith.constant dense<0.000000e+00> : vector<128xf32>
    %81 = vector.multi_reduction <add>, %78, %cst_66 [0] : vector<32x128xf32> to vector<128xf32>
    %82 = vector.shape_cast %81 : vector<128xf32> to vector<1x128xf32>
    %cst_67 = arith.constant 3.125000e-02 : f32
    %83 = vector.broadcast %cst_67 : f32 to vector<1x128xf32>
    %84 = arith.mulf %82, %83 : vector<1x128xf32>
    %85 = vector.broadcast %84 : vector<1x128xf32> to vector<32x128xf32>
    %86 = arith.subf %78, %85 : vector<32x128xf32>
    %87 = arith.mulf %86, %86 : vector<32x128xf32>
    %cst_68 = arith.constant dense<0.000000e+00> : vector<128xf32>
    %88 = vector.multi_reduction <add>, %87, %cst_68 [0] : vector<32x128xf32> to vector<128xf32>
    %89 = vector.shape_cast %88 : vector<128xf32> to vector<1x128xf32>
    %cst_69 = arith.constant 3.125000e-02 : f32
    %90 = vector.broadcast %cst_69 : f32 to vector<1x128xf32>
    %91 = arith.mulf %89, %90 : vector<1x128xf32>
    %cst_70 = arith.constant 9.99999974E-6 : f32
    %92 = vector.broadcast %cst_70 : f32 to vector<1x128xf32>
    %93 = arith.addf %91, %92 : vector<1x128xf32>
    %94 = math.rsqrt %93 : vector<1x128xf32>
    %95 = arith.mulf %94, %79 : vector<1x128xf32>
    %96 = vector.broadcast %95 : vector<1x128xf32> to vector<32x128xf32>
    %97 = arith.mulf %86, %96 : vector<32x128xf32>
    %98 = vector.broadcast %80 : vector<1x128xf32> to vector<32x128xf32>
    %99 = arith.addf %97, %98 : vector<32x128xf32>
    %100 = vector.shape_cast %99 : vector<32x128xf32> to vector<2x2048xf32>
    %101 = arith.truncf %100 : vector<2x2048xf32> to vector<2x2048xbf16>
    %c0_71 = arith.constant 0 : index
    %c0_72 = arith.constant 0 : index
    %102 = vector.load %arg8[%c0_71, %c0_72] : memref<2048x128xbf16, #tpu.memory_space<vmem>>, vector<2048x128xbf16>
    %cst_73 = arith.constant dense<0.000000e+00> : vector<2x128xf32>
    %103 = tpu.matmul %101, %102, %cst_73 {dimension_numbers = #tpu.dot_dimension_numbers<[1], [0], [0], [1], [0, 0, 1, 1], [], []>} : vector<2x2048xbf16>, vector<2048x128xbf16>, vector<2x128xf32> -> vector<2x128xf32>
    %c0_74 = arith.constant 0 : index
    %c0_75 = arith.constant 0 : index
    %104 = vector.load %arg9[%c0_74, %c0_75] : memref<1x128xf32, #tpu.memory_space<vmem>>, vector<1x128xf32>
    %105 = vector.broadcast %104 : vector<1x128xf32> to vector<2x128xf32>
    %106 = arith.addf %103, %105 : vector<2x128xf32>
    %cst_76 = arith.constant 0.000000e+00 : f32
    %107 = vector.broadcast %cst_76 : f32 to vector<2x128xf32>
    %108 = arith.maximumf %106, %107 : vector<2x128xf32>
    %c0_77 = arith.constant 0 : index
    %c0_78 = arith.constant 0 : index
    %109 = vector.load %arg10[%c0_77, %c0_78] : memref<1x128xf32, #tpu.memory_space<vmem>>, vector<1x128xf32>
    %c0_79 = arith.constant 0 : index
    %c0_80 = arith.constant 0 : index
    %110 = vector.load %arg11[%c0_79, %c0_80] : memref<1x128xf32, #tpu.memory_space<vmem>>, vector<1x128xf32>
    %cst_81 = arith.constant dense<0.000000e+00> : vector<128xf32>
    %111 = vector.multi_reduction <add>, %108, %cst_81 [0] : vector<2x128xf32> to vector<128xf32>
    %112 = vector.shape_cast %111 : vector<128xf32> to vector<1x128xf32>
    %cst_82 = arith.constant 5.000000e-01 : f32
    %113 = vector.broadcast %cst_82 : f32 to vector<1x128xf32>
    %114 = arith.mulf %112, %113 : vector<1x128xf32>
    %115 = vector.broadcast %114 : vector<1x128xf32> to vector<2x128xf32>
    %116 = arith.subf %108, %115 : vector<2x128xf32>
    %117 = arith.mulf %116, %116 : vector<2x128xf32>
    %cst_83 = arith.constant dense<0.000000e+00> : vector<128xf32>
    %118 = vector.multi_reduction <add>, %117, %cst_83 [0] : vector<2x128xf32> to vector<128xf32>
    %119 = vector.shape_cast %118 : vector<128xf32> to vector<1x128xf32>
    %cst_84 = arith.constant 5.000000e-01 : f32
    %120 = vector.broadcast %cst_84 : f32 to vector<1x128xf32>
    %121 = arith.mulf %119, %120 : vector<1x128xf32>
    %cst_85 = arith.constant 9.99999974E-6 : f32
    %122 = vector.broadcast %cst_85 : f32 to vector<1x128xf32>
    %123 = arith.addf %121, %122 : vector<1x128xf32>
    %124 = math.rsqrt %123 : vector<1x128xf32>
    %125 = arith.mulf %124, %109 : vector<1x128xf32>
    %126 = vector.broadcast %125 : vector<1x128xf32> to vector<2x128xf32>
    %127 = arith.mulf %116, %126 : vector<2x128xf32>
    %128 = vector.broadcast %110 : vector<1x128xf32> to vector<2x128xf32>
    %129 = arith.addf %127, %128 : vector<2x128xf32>
    %130 = arith.truncf %129 : vector<2x128xf32> to vector<2x128xbf16>
    %c0_86 = arith.constant 0 : index
    %c0_87 = arith.constant 0 : index
    %131 = vector.load %arg12[%c0_86, %c0_87] : memref<128x128xbf16, #tpu.memory_space<vmem>>, vector<128x128xbf16>
    %cst_88 = arith.constant dense<0.000000e+00> : vector<2x128xf32>
    %132 = tpu.matmul %130, %131, %cst_88 {dimension_numbers = #tpu.dot_dimension_numbers<[1], [0], [0], [1], [0, 0, 1, 1], [], []>} : vector<2x128xbf16>, vector<128x128xbf16>, vector<2x128xf32> -> vector<2x128xf32>
    %c0_89 = arith.constant 0 : index
    %c0_90 = arith.constant 0 : index
    %133 = vector.load %arg13[%c0_89, %c0_90] : memref<1x128xf32, #tpu.memory_space<vmem>>, vector<1x128xf32>
    %134 = vector.broadcast %133 : vector<1x128xf32> to vector<2x128xf32>
    %135 = arith.addf %132, %134 : vector<2x128xf32>
    %c0_91 = arith.constant 0 : index
    %c0_92 = arith.constant 0 : index
    %136 = vector.load %arg15[%c0_91, %c0_92] : memref<2x128xf32, #tpu.memory_space<vmem>>, vector<2x128xf32>
    tpu.vector_store %arg15[%c0_91, %c0_92], %129 {strides = array<i32>} : memref<2x128xf32, #tpu.memory_space<vmem>>, vector<2x128xf32>,
    %c0_93 = arith.constant 0 : index
    %c0_94 = arith.constant 0 : index
    %137 = vector.load %arg14[%c0_93, %c0_94] : memref<2x128xf32, #tpu.memory_space<vmem>>, vector<2x128xf32>
    tpu.vector_store %arg14[%c0_93, %c0_94], %135 {strides = array<i32>} : memref<2x128xf32, #tpu.memory_space<vmem>>, vector<2x128xf32>,
    return
  }
}

</mosaic_0001>

<bundles_post_ra>
// kernel: custom-call.1
= control target key start
LH: loop header
LB: loop body
LE: loop exit
PB: predicated region body
PF: predicated region fallthrough
CT: control target
= control target key end

     0   :  { %s59_s0 = inlined_call_operand.hbm [shape: c64[2,2,16], index: 0, kind: input, shape index: {}]   ;;  %s60_s1 = inlined_call_operand.vmem [shape: f32[2,2,16], index: 1, kind: output, shape index: {}]  }
   0x1   :  { %s2_s8 = scalar_lea.hbm %s59_s0, 64 }
   0x2   :  { %3 = vsyncpa [#allocation0], 0  ;;  %s4_s11 = sshll.u32 %s60_s1, 4  ;;  %s34_s14 = scalar_lea.hbm %s59_s0, 128  ;;  %s5_s11 = int_to_ptr.vmem [resolvable:$true] %s4_s11 }
   0x3   :  { %p11_p0 = scmp.ne.s32.totalorder %s2_s8, %s34_s14  ;;  %p13_p1 = scmp.lt.u32.totalorder %s2_s8, %s59_s0 }
   0x4   :  { %p14_p2 = scmp.lt.u32.totalorder %s34_s14, %s34_s14  ;;  %p16_p4 = scmp.lt.u32.totalorder %s34_s14, %s2_s8 }
   0x6   :  { %p15_p3 = por %p14_p2, %p13_p1 }
   0x8   :  { %p17_p5 = por %p16_p4, %p15_p3 }
   0xa   :  { %p18_p6 = pnand %p17_p5, %p11_p0 }
   0xc   :  { %21 = shalt.err (!%p18_p6)  }
   0xd   :  { %s22_s17 = scalar_lea.vmem %s5_s11, 64  ;;  %p27_p8 = scmp.lt.s32.totalorder %s5_s11, %s5_s11 }
   0xe   :  { %p23_p7 = scmp.ne.s32.totalorder %s5_s11, %s22_s17  ;;  %p28_p9 = scmp.lt.s32.totalorder %s22_s17, %s22_s17 }
  0x10   :  { %p29_p10 = por %p28_p9, %p27_p8 }
  0x12   :  { %p30_p11 = pnand %p29_p10, %p23_p7 }
  0x14   :  { %33 = shalt.err (!%p30_p11)  }
  0x15   :  { %7 = dma.hbm_to_vmem [thread:$0]  %s2_s8, 64, %s5_s11, [#allocation0] }
  0x16   :  { %35 = dma.done.wait [#allocation0], 64  }
  0x17   :  { %36 = vsyncadd [#allocation0], 4294967232 }
  0x18   :  { %9 = vsyncpa [#allocation0], 1 }

// kernel: custom-call
= control target key start
LH: loop header
LB: loop body
LE: loop exit
PB: predicated region body
PF: predicated region fallthrough
CT: control target
= control target key end

     0   :  { %2 = vsyncpa [#allocation0], 0  ;;  %s61_s0 = inlined_call_operand.hbm [shape: c64[2,2,16], index: 0, kind: input, shape index: {}]   ;;  %s62_s1 = inlined_call_operand.vmem [shape: f32[2,2,16], index: 1, kind: output, shape index: {}]  }
   0x1   :  { %s3_s8 = sshll.u32 %s62_s1, 4  ;;  %s9_s11 = scalar_lea.hbm %s61_s0, 64  ;;  %s4_s8 = int_to_ptr.vmem [resolvable:$true] %s3_s8 }
   0x2   :  { %p10_p0 = scmp.ne.s32.totalorder %s61_s0, %s9_s11  ;;  %s11_s16 = scalar_lea.hbm %s61_s0, 128 }
   0x3   :  { %p12_p1 = scmp.lt.u32.totalorder %s11_s16, %s9_s11  ;;  %p13_p2 = scmp.lt.u32.totalorder %s9_s11, %s61_s0 }
   0x5   :  { %p14_p3 = por %p13_p2, %p12_p1 }
   0x7   :  { %p15_p4 = pnand %p14_p3, %p10_p0 }
   0x9   :  { %18 = shalt.err (!%p15_p4)  }
   0xa   :  { %s19_s1 = scalar_lea.vmem %s4_s8, 64  ;;  %p24_p6 = scmp.lt.s32.totalorder %s4_s8, %s4_s8 }
   0xb   :  { %p20_p5 = scmp.ne.s32.totalorder %s4_s8, %s19_s1  ;;  %p25_p7 = scmp.lt.s32.totalorder %s19_s1, %s19_s1 }
   0xd   :  { %p26_p8 = por %p25_p7, %p24_p6 }
   0xf   :  { %p27_p9 = pnand %p26_p8, %p20_p5 }
  0x11   :  { %30 = shalt.err (!%p27_p9)  }
  0x12   :  { %6 = dma.hbm_to_vmem [thread:$0]  %s61_s0, 64, %s4_s8, [#allocation0] }
  0x13   :  { %31 = dma.done.wait [#allocation0], 64  }
  0x14   :  { %32 = vsyncadd [#allocation0], 4294967232 }
  0x15   :  { %8 = vsyncpa [#allocation0], 1 }

// kernel: vtcnn2_1d_forward.1
= control target key start
LH: loop header
LB: loop body
LE: loop exit
PB: predicated region body
PF: predicated region fallthrough
CT: control target
= control target key end

     0   :  { %21 = vsyncpa [#allocation4], 0  ;;  %s5055_s0 = inlined_call_operand.vmem [shape: bf16[32,28], index: 0, kind: input, shape index: {}]   ;;  %s5056_s1 = inlined_call_operand.vmem [shape: bf16[28,256], index: 1, kind: input, shape index: {}]   ;;  %s5057_s2 = inlined_call_operand.vmem [shape: f32[1,256], index: 2, kind: input, shape index: {}]   ;;  %s5058_s3 = inlined_call_operand.vmem [shape: f32[1,256], index: 3, kind: input, shape index: {}]   ;;  %s5059_s4 = inlined_call_operand.hbm [shape: bf16[7,256,128], index: 4, kind: input, shape index: {}]   ;;  %s5060_s5 = inlined_call_operand.vmem [shape: f32[1,128], index: 5, kind: input, shape index: {}]   ;;  %s5061_s6 = inlined_call_operand.vmem [shape: f32[1,128], index: 6, kind: input, shape index: {}]   ;;  %s5062_s7 = inlined_call_operand.vmem [shape: f32[1,128], index: 7, kind: input, shape index: {}]   ;;  %s5063_s8 = inlined_call_operand.hbm [shape: bf16[2048,128], index: 8, kind: input, shape index: {}]   ;;  %s5064_s9 = inlined_call_operand.vmem [shape: f32[1,128], index: 9, kind: input, shape index: {}]   ;;  %s5065_s10 = inlined_call_operand.vmem [shape: f32[1,128], index: 10, kind: input, shape index: {}]   ;;  %s5066_s11 = inlined_call_operand.vmem [shape: f32[1,128], index: 11, kind: input, shape index: {}]   ;;  %s5067_s12 = inlined_call_operand.vmem [shape: bf16[128,128], index: 12, kind: input, shape index: {}]   ;;  %s5068_s13 = inlined_call_operand.vmem [shape: f32[1,128], index: 13, kind: input, shape index: {}]   ;;  %s5069_s14 = inlined_call_operand.hbm [shape: f32[2,128], index: 14, kind: output, shape index: {0}]   ;;  %s5070_s15 = inlined_call_operand.hbm [shape: f32[2,128], index: 15, kind: output, shape index: {1}]  }
   0x1   :  { %22 = vsyncpa [#allocation7], 0 }
   0x2   :  { %23 = vsyncpa [#allocation5], 0 }
   0x3   :  { %24 = vsyncpa [#allocation10], 0  ;;  %s4683_s18 = smov [#allocation3]   ;;  %s4587_s22 = scalar_lea.hbm %s5059_s4, 14336 }
   0x4   :  { %s38_s19 = sshll.u32 %s4683_s18, 4  ;;  %p4588_p0 = scmp.ne.s32.totalorder %s5059_s4, %s4587_s22  ;;  %s39_s19 = int_to_ptr.vmem [resolvable:$true] %s38_s19 }
   0x5   :  { %p4591_p1 = scmp.lt.u32.totalorder %s4587_s22, %s5059_s4 }
   0x7   :  { %p4593_p2 = pnand %p4591_p1, %p4588_p0 }
   0x9   :  { %4596 = shalt.err (!%p4593_p2)
}
   0xa   :  { %s4597_s27 = scalar_lea.vmem %s39_s19, 14336  ;;  %p4602_p4 = scmp.lt.s32.totalorder %s39_s19, %s39_s19 }
   0xb   :  { %p4598_p3 = scmp.ne.s32.totalorder %s39_s19, %s4597_s27  ;;  %p4603_p5 = scmp.lt.s32.totalorder %s4597_s27, %s4597_s27 }
   0xd   :  { %p4604_p6 = por %p4603_p5, %p4602_p4 }
   0xf   :  { %p4605_p7 = pnand %p4604_p6, %p4598_p3 }
  0x11   :  { %4608 = shalt.err (!%p4605_p7)
}
  0x12   :  { %s4684_s28 = smov 64   ;;  %s4685_s29 = smov 4  }
  0x13   :  { %44 = dma.hbm_to_vmem [thread:$0]  %s5059_s4, 14336, %s39_s19, [#allocation4], %s4684_s28, %s4684_s28, %s4685_s29  }
  0x14   :  { %s4686_s17 = smov [#allocation6]   ;;  %s4609_s22 = scalar_lea.hbm %s5063_s8, 16384 }
  0x15   :  { %s56_s18 = sshll.u32 %s4686_s17, 4  ;;  %p4610_p8 = scmp.ne.s32.totalorder %s5063_s8, %s4609_s22  ;;  %s57_s18 = int_to_ptr.vmem [resolvable:$true] %s56_s18 }
  0x16   :  { %p4613_p9 = scmp.lt.u32.totalorder %s4609_s22, %s5063_s8 }
  0x18   :  { %p4615_p10 = pnand %p4613_p9, %p4610_p8 }
  0x1a   :  { %4618 = shalt.err (!%p4615_p10)
}
  0x1b   :  { %s4619_s27 = scalar_lea.vmem %s57_s18, 16384  ;;  %p4624_p12 = scmp.lt.s32.totalorder %s57_s18, %s57_s18 }
  0x1c   :  { %p4620_p11 = scmp.ne.s32.totalorder %s57_s18, %s4619_s27  ;;  %p4625_p13 = scmp.lt.s32.totalorder %s4619_s27, %s4619_s27 }
  0x1e   :  { %p4626_p0 = por %p4625_p13, %p4624_p12 }
  0x20   :  { %p4627_p1 = pnand %p4626_p0, %p4620_p11 }
  0x22   :  { %4630 = shalt.err (!%p4627_p1)
}
  0x23   :  { %62 = dma.hbm_to_vmem [thread:$0]  %s5063_s8, 16384, %s57_s18, [#allocation7], %s4684_s28, %s4684_s28, %s4685_s29  }
  0x24   :  { %4675 = dma.done.wait [#allocation4], 14336  }
  0x25   :  { %4676 = vsyncadd [#allocation4], 4294952960 }
  0x26   :  { %4677 = dma.done.wait [#allocation7], 16384  }
  0x27   :  { %4678 = vsyncadd [#allocation7], 4294950912  ;;  %v4687_v0 = vmov 0   ;;  %v4323_v1 = vld [vmem:[%s5056_s1 + $0x4] ss:$8 sps:$4 sm:$0xff]   ;;  %vm123_vm0 = vcmask 1045504  }
  0x28   :  { %162 = vmatprep.mubr.bf16.mxu0 %v4687_v0  ;;  %301 = vst [vmem:[#allocation2] sm:$0xff] %v4687_v0  ;;  %302 = vst [vmem:[#allocation2 + $0x8] sm:$0xff] %v4687_v0  ;;  %v4325_v2 = vld [vmem:[%s5056_s1] ss:$8 sps:$4 sm:$0xff]   ;;  %130 = vmatprep.subr.bf16.mxu0 %v4323_v1  ;;  %vm116_vm1 = vcmask 228352   ;;  %v4337_v14 = vld [vmem:[#allocation3 + $0xd0] sm:$0xff]  }
  0x29   :  { %303 = vst [vmem:[#allocation2 + $0x30] sm:$0xff] %v4687_v0  ;;  %304 = vst [vmem:[#allocation2 + $0x38] sm:$0xff] %v4687_v0  ;;  %v4326_v3 = vld [vmem:[%s5056_s1 + $0x14] ss:$8 sps:$4 sm:$0x3f]   ;;  %131 = vmatpush1.bf16.msra.mxu0 %v4325_v2  ;;  %v4329_v6 = vld [vmem:[%s5055_s0] sm:$0xff]  }
  0x2a   :  { %305 = vst [vmem:[#allocation2 + $0x20] sm:$0xff] %v4687_v0  ;;  %306 = vst [vmem:[#allocation2 + $0x28] sm:$0xff] %v4687_v0  ;;  %v4328_v4 = vld [vmem:[%s5056_s1 + $0x10] ss:$8 sps:$4 sm:$0x3f]   ;;  %3656 = vmatprep.subr.msk.bf16.mxu0 %vm123_vm0, %v4326_v3  ;;  %v4330_v7 = vld [vmem:[%s5055_s0 + $0x8] sm:$0xff]  }
  0x2b   :  { %307 = vst [vmem:[#allocation2 + $0x50] sm:$0xff] %v4687_v0  ;;  %308 = vst [vmem:[#allocation2 + $0x58] sm:$0xff] %v4687_v0  ;;  %v125_v5 = vsel %vm123_vm0, %v4328_v4, 0  ;;  %v4331_v8 = vld [vmem:[#allocation3 + $0xc0] sm:$0xff]   ;;  %v4333_v10 = vld [vmem:[#allocation3 + $0xc8] sm:$0xff]   ;;  %vm442_vm2 = vcmask 1040384  }
  0x2c   :  { %v4332_v9 = vld [vmem:[#allocation3 + $0x80] sm:$0xff]   ;;  %3912 = vmatprep.subr.bf16.mxu1 %v4331_v8  ;;  %v4335_v12 = vld [vmem:[#allocation3 + $0x88] sm:$0xff]   ;;  %v4339_v16 = vld [vmem:[#allocation3 + $0x90] sm:$0xff]   ;;  %vm325_vm3 = vsmask.f32 1280  ;;  %vm1458_vm6 = vcmask 1046528  }
  0x2d   :  { %133 = vmatpush1.bf16.msra.mxu0 %v125_v5  ;;  %3913 = vmatpush3.bf16.msra.mxu1 %v4332_v9  ;;  %v4334_v11 = vld [vmem:[#allocation3 + $0x40] sm:$0xff]   ;;  %v4338_v15 = vld [vmem:[#allocation3 + $0x48] sm:$0xff]   ;;  %v4341_v18 = vld [vmem:[#allocation3 + $0xd8] sm:$0xff]   ;;  %vm786_vm4 = vsmask.f32 256  ;;  %vm4690_vm8 = vmmov 0  }
  0x2e   :  { %v4336_v13 = vld [vmem:[#allocation3] sm:$0xff]   ;;  %3914 = vmatprep.subr.bf16.mxu1 %v4333_v10  ;;  %3940 = vmatprep.subr.bf16.mxu0 %v4334_v11  ;;  %v4340_v17 = vld [vmem:[#allocation3 + $0x8] sm:$0xff]   ;;  %v4342_v19 = vld [vmem:[#allocation3 + $0x50] sm:$0xff]   ;;  %vm1211_vm5 = vsmask.f32 7424  ;;  %vm3472_vm9 = vcmask 1041408  }
  0x2f   :  { %v4343_v20 = vld [vmem:[#allocation3 + $0x98] sm:$0xff]   ;;  %v4344_v21 = vld [vmem:[#allocation3 + $0x10] sm:$0xff]   ;;  %v4345_v22 = vld [vmem:[#allocation3 + $0xe0] sm:$0xff]   ;;  %vm1661_vm7 = vsmask.f32 6400 }
  0x30   :  { %3657 = vmatmul.mubr.msk.bf16.vlgmr.msra.gmra.mrb[0].mxu0 %vm116_vm1, %v4329_v6  ;;  %v4346_v23 = vld [vmem:[#allocation3 + $0x58] sm:$0xff]   ;;  %v4347_v24 = vld [vmem:[#allocation3 + $0xa0] sm:$0xff]   ;;  %v4349_v26 = vld [vmem:[#allocation3 + $0xe8] sm:$0xff]  }
  0x31   :  { %172 = vmatprep.mubr.bf16.mxu0 %v4687_v0  ;;  %3915 = vmatpush3.bf16.msra.mxu1 %v4335_v12  ;;  %v4348_v25 = vld [vmem:[#allocation3 + $0x18] sm:$0xff]   ;;  %v4350_v27 = vld [vmem:[#allocation3 + $0x60] sm:$0xff]   ;;  %v4351_v28 = vld [vmem:[#allocation3 + $0xa8] sm:$0xff]  }
  0x32   :  { %3941 = vmatpush3.bf16.msra.mxu0 %v4336_v13  ;;  %3916 = vmatprep.subr.bf16.mxu1 %v4337_v14  ;;  %v4352_v29 = vld [vmem:[#allocation3 + $0x20] sm:$0xff]   ;;  %v4353_v30 = vld [vmem:[#allocation3 + $0xf0] sm:$0xff]   ;;  %v4354_v31 = vld [vmem:[#allocation3 + $0x68] sm:$0xff]  }
  0x33   :  { %3942 = vmatprep.subr.bf16.mxu0 %v4338_v15  ;;  %v4355_v32 = vld [vmem:[#allocation3 + $0xb0] sm:$0xff]   ;;  %v4356_v33 = vld [vmem:[#allocation3 + $0x28] sm:$0xff]   ;;  %v4357_v34 = vld [vmem:[#allocation3 + $0xf8] sm:$0xff]  }
  0x34   :  { %v4358_v35 = vld [vmem:[#allocation3 + $0x70] sm:$0xff]   ;;  %v4359_v36 = vld [vmem:[#allocation3 + $0xb8] sm:$0xff]   ;;  %v4362_v39 = vld [vmem:[#allocation3 + $0x140] sm:$0xff]  }
  0x35   :  { %3917 = vmatpush3.bf16.msra.mxu1 %v4339_v16  ;;  %v4360_v37 = vld [vmem:[#allocation3 + $0x30] sm:$0xff]   ;;  %v4361_v38 = vld [vmem:[#allocation3 + $0x78] sm:$0xff]   ;;  %v4366_v41 = vld [vmem:[#allocation3 + $0x1c0] sm:$0xff]  }
  0x36   :  { %3943 = vmatpush3.bf16.msra.mxu0 %v4340_v17  ;;  %3918 = vmatprep.subr.bf16.mxu1 %v4341_v18  ;;  %v4363_v40 = vld [vmem:[#allocation3 + $0x38] sm:$0xff]  }
  0x37   :  { %3944 = vmatprep.subr.bf16.mxu0 %v4342_v19 }
  0x38   :  { %3658 = vmatmul.mubr.msk.bf16.gmra.mrb[4].mxu0 %vm116_vm1, %v4330_v7 }
  0x39   :  { %3919 = vmatpush3.bf16.msra.mxu1 %v4343_v20 }
  0x3a   :  { %3945 = vmatpush3.bf16.msra.mxu0 %v4344_v21  ;;  %3920 = vmatprep.subr.bf16.mxu1 %v4345_v22 }
  0x3b   :  { %3946 = vmatprep.subr.bf16.mxu0 %v4346_v23 }
  0x3d   :  { %3921 = vmatpush3.bf16.msra.mxu1 %v4347_v24 }
  0x3e   :  { %3947 = vmatpush3.bf16.msra.mxu0 %v4348_v25  ;;  %3922 = vmatprep.subr.bf16.mxu1 %v4349_v26 }
  0x3f   :  { %3948 = vmatprep.subr.bf16.mxu0 %v4350_v27 }
  0x41   :  { %3923 = vmatpush3.bf16.msra.mxu1 %v4351_v28 }
  0x42   :  { %3949 = vmatpush3.bf16.msra.mxu0 %v4352_v29  ;;  %3924 = vmatprep.subr.bf16.mxu1 %v4353_v30 }
  0x43   :  { %3950 = vmatprep.subr.bf16.mxu0 %v4354_v31 }
  0x45   :  { %3925 = vmatpush3.bf16.msra.mxu1 %v4355_v32 }
  0x46   :  { %3951 = vmatpush3.bf16.msra.mxu0 %v4356_v33  ;;  %3926 = vmatprep.subr.bf16.mxu1 %v4357_v34 }
  0x47   :  { %3952 = vmatprep.subr.bf16.mxu0 %v4358_v35 }
  0x49   :  { %3927 = vmatpush3.bf16.msra.mxu1 %v4359_v36 }
  0x4a   :  { %3953 = vmatpush3.bf16.msra.mxu0 %v4360_v37  ;;  %3968 = vmatprep.subr.bf16.mxu1 %v4362_v39 }
  0x4b   :  { %3954 = vmatprep.subr.bf16.mxu0 %v4361_v38 }
  0x4e   :  { %3955 = vmatpush3.bf16.msra.mxu0 %v4363_v40 }
  0x4f   :  { %3996 = vmatprep.subr.bf16.mxu0 %v4366_v41 }
 0x103   :  { %v164_v42 = vpop.f32.mrb[0].mxu0 }
 0x104   :  { %v166_v43 = vpop.f32.mrb[1].mxu0  ;;  %v183_v45 = vmax.f32 %v164_v42, 0.0 }
 0x105   :  { %v168_v44 = vpop.f32.mrb[2].mxu0  ;;  %v184_v48 = vmax.f32 %v166_v43, 0.0 }
 0x106   :  { %v185_v46 = vmax.f32 %v168_v44, 0.0  ;;  %v170_v47 = vpop.f32.mrb[3].mxu0 }
 0x107   :  { %v186_v49 = vmax.f32 %v170_v47, 0.0  ;;  %v254_v47 = vlaneseq }
 0x108   :  { %v193_v50 = vadd.f32 %v185_v46, %v183_v45 }
 0x109   :  { %v202_v51 = vadd.f32 %v186_v49, %v184_v48 }
 0x10b   :  { %v174_v52 = vpop.f32.mrb[4].mxu0 }
 0x10c   :  { %v187_v53 = vmax.f32 %v174_v52, 0.0  ;;  %v176_v54 = vpop.f32.mrb[5].mxu0  ;;  %v4815_v52 = vshrl.u32 %v254_v47, 7 }
 0x10d   :  { %v188_v55 = vmax.f32 %v176_v54, 0.0  ;;  %v178_v56 = vpop.f32.mrb[6].mxu0 }
 0x10e   :  { %v194_v57 = vadd.f32 %v193_v50, %v187_v53  ;;  %v189_v58 = vmax.f32 %v178_v56, 0.0  ;;  %v180_v59 = vpop.f32.mrb[7].mxu0  ;;  %v4818_v54 = vsub.s32 0, %v4815_v52  ;;  %v260_v56 = vsub.s32 1, %v4815_v52 }
 0x10f   :  { %v203_v60 = vadd.f32 %v202_v51, %v188_v55  ;;  %v190_v61 = vmax.f32 %v180_v59, 0.0 }
 0x110   :  { %v195_v62 = vadd.f32 %v194_v57, %v189_v58 }
 0x111   :  { %v204_v63 = vadd.f32 %v203_v60, %v190_v61  ;;  %v192_v60 = vld [vmem:[%s5058_s3] sm:$0x3] }
 0x112   :  { %v196_v0 = vrot.slane %v195_v62, 4 }
 0x113   :  { %v205_v1 = vrot.slane %v204_v63, 4 }
 0x114   :  { %v197_v2 = vadd.f32 %v196_v0, %v195_v62 }
 0x115   :  { %v206_v3 = vadd.f32 %v205_v1, %v204_v63  ;;  %v286_v1 = vrot.slane %v192_v60, %v4818_v54 }
 0x116   :  { %v198_v4 = vrot.slane %v197_v2, 2 }
 0x117   :  { %v207_v5 = vrot.slane %v206_v3, 2 }
 0x118   :  { %v199_v6 = vadd.f32 %v198_v4, %v197_v2 }
 0x119   :  { %v208_v7 = vadd.f32 %v207_v5, %v206_v3  ;;  %v290_v3 = vrot.slane %v192_v60, %v260_v56 }
 0x11a   :  { %v200_v8 = vrot.slane %v199_v6, 1 }
 0x11b   :  { %v209_v9 = vrot.slane %v208_v7, 1 }
 0x11c   :  { %v201_v10 = vadd.f32 %v200_v8, %v199_v6 }
 0x11d   :  { %v210_v11 = vadd.f32 %v209_v9, %v208_v7 }
 0x11e   :  { %v211_v12 = vmul.f32 0.03125, %v201_v10 }
 0x11f   :  { %v212_v13 = vmul.f32 0.03125, %v210_v11 }
 0x120   :  { %v213_v14 = vsub.f32 %v183_v45, %v211_v12  ;;  %v215_v15 = vsub.f32 %v185_v46, %v211_v12  ;;  %v217_v16 = vsub.f32 %v187_v53, %v211_v12  ;;  %v219_v17 = vsub.f32 %v189_v58, %v211_v12  ;;  %v317_v12 = vld [vmem:[#allocation2] sm:$0xc0] }
 0x121   :  { %v214_v18 = vsub.f32 %v184_v48, %v212_v13  ;;  %v216_v19 = vsub.f32 %v186_v49, %v212_v13  ;;  %v218_v20 = vsub.f32 %v188_v55, %v212_v13  ;;  %v220_v21 = vsub.f32 %v190_v61, %v212_v13  ;;  %v191_v55 = vld [vmem:[%s5057_s2] sm:$0x3] }
 0x122   :  { %v221_v22 = vmul.f32 %v213_v14, %v213_v14  ;;  %v223_v23 = vmul.f32 %v215_v15, %v215_v15  ;;  %v225_v26 = vmul.f32 %v217_v16, %v217_v16  ;;  %v227_v30 = vmul.f32 %v219_v17, %v219_v17 }
 0x123   :  { %v222_v24 = vmul.f32 %v214_v18, %v214_v18  ;;  %v224_v25 = vmul.f32 %v216_v19, %v216_v19  ;;  %v226_v28 = vmul.f32 %v218_v20, %v218_v20  ;;  %v228_v32 = vmul.f32 %v220_v21, %v220_v21 }
 0x124   :  { %v229_v27 = vadd.f32 %v223_v23, %v221_v22  ;;  %v257_v57 = vrot.slane %v191_v55, %v4818_v54  ;;  %v261_v58 = vrot.slane %v191_v55, %v260_v56 }
 0x125   :  { %v238_v29 = vadd.f32 %v224_v25, %v222_v24  ;;  %v318_v25 = vld [vmem:[#allocation2 + $0x8] sm:$0xc0] }
 0x126   :  { %v230_v31 = vadd.f32 %v229_v27, %v225_v26 }
 0x127   :  { %v239_v33 = vadd.f32 %v238_v29, %v226_v28 }
 0x128   :  { %v231_v34 = vadd.f32 %v230_v31, %v227_v30  ;;  %v4843_v31 = vld [vmem:[#allocation2 + $0x8] sm:$0x80] }
 0x129   :  { %v240_v35 = vadd.f32 %v239_v33, %v228_v32 }
 0x12a   :  { %v232_v36 = vrot.slane %v231_v34, 4 }
 0x12b   :  { %v241_v37 = vrot.slane %v240_v35, 4 }
 0x12c   :  { %v233_v38 = vadd.f32 %v232_v36, %v231_v34 }
 0x12d   :  { %v242_v39 = vadd.f32 %v241_v37, %v240_v35 }
 0x12e   :  { %v234_v40 = vrot.slane %v233_v38, 2 }
 0x12f   :  { %v243_v41 = vrot.slane %v242_v39, 2 }
 0x130   :  { %v235_v42 = vadd.f32 %v234_v40, %v233_v38  ;;  %v4849_v38 = vld [vmem:[#allocation2] sm:$0x80]  ;;  %v4853_v40 = vld [vmem:[#allocation2 + $0x30] sm:$0x80] }
 0x131   :  { %v244_v43 = vadd.f32 %v243_v41, %v242_v39  ;;  %v4851_v39 = vld [vmem:[#allocation2 + $0x38] sm:$0x80]  ;;  %v446_v41 = vrot.slane %v4843_v31, 7 }
 0x132   :  { %v236_v44 = vrot.slane %v235_v42, 1 }
 0x133   :  { %v245_v45 = vrot.slane %v244_v43, 1 }
 0x134   :  { %v237_v46 = vadd.f32 %v236_v44, %v235_v42  ;;  %v800_v42 = vshrl.u32 %v4843_v31, 16  ;;  %v321_v44 = vld [vmem:[#allocation2 + $0x30] sm:$0xc0] }
 0x135   :  { %v246_v48 = vadd.f32 %v245_v45, %v244_v43  ;;  %v443_v43 = vrot.slane %v4849_v38, 7  ;;  %v452_v45 = vrot.slane %v4851_v39, 7 }
 0x136   :  { %v247_v49 = vmul.f32 0.03125, %v237_v46 }
 0x137   :  { %v248_v50 = vmul.f32 0.03125, %v246_v48  ;;  %v449_v48 = vrot.slane %v4853_v40, 7 }
 0x138   :  { %v249_v51 = vadd.f32 1e-05, %v247_v49 }
 0x139   :  { %v250_v53 = vadd.f32 1e-05, %v248_v50 }
 0x13a   :  { %4579 = vrsqrt.f32 %v249_v51 }
 0x13b   :  { %4581 = vrsqrt.f32 %v250_v53 }
 0x144   :  { %v4580_v59 = vpop.eup %4579 }
 0x145   :  { %v4582_v61 = vpop.eup %4581  ;;  %v264_v62 = vmul.f32 %v4580_v59, %v257_v57  ;;  %v361_v59 = vshrl.u32 %v321_v44, 16 }
 0x146   :  { %v265_v63 = vmul.f32 %v4582_v61, %v261_v58 }
 0x147   :  { %v269_v0 = vrot.slane %v264_v62, %v4818_v54 }
 0x148   :  { %v273_v2 = vrot.slane %v265_v63, %v4818_v54 }
 0x149   :  { %v274_v4 = vmul.f32 %v269_v0, %v213_v14  ;;  %v276_v5 = vmul.f32 %v269_v0, %v215_v15  ;;  %v278_v6 = vmul.f32 %v269_v0, %v217_v16  ;;  %v280_v7 = vmul.f32 %v269_v0, %v219_v17 }
 0x14a   :  { %v275_v8 = vmul.f32 %v273_v2, %v214_v18  ;;  %v277_v9 = vmul.f32 %v273_v2, %v216_v19  ;;  %v279_v10 = vmul.f32 %v273_v2, %v218_v20  ;;  %v281_v11 = vmul.f32 %v273_v2, %v220_v21  ;;  %v322_v21 = vld [vmem:[#allocation2 + $0x38] sm:$0xc0] }
 0x14b   :  { %v293_v13 = vadd.f32 %v286_v1, %v274_v4  ;;  %v295_v22 = vadd.f32 %v286_v1, %v276_v5  ;;  %v297_v23 = vadd.f32 %v286_v1, %v278_v6  ;;  %v299_v24 = vadd.f32 %v286_v1, %v280_v7 }
 0x14c   :  { %v294_v26 = vadd.f32 %v290_v3, %v275_v8  ;;  %v296_v27 = vadd.f32 %v290_v3, %v277_v9  ;;  %v298_v28 = vadd.f32 %v290_v3, %v279_v10  ;;  %v300_v29 = vadd.f32 %v290_v3, %v281_v11  ;;  %v4364_v3 = vld [vmem:[#allocation3 + $0x100] sm:$0xff]   ;;  %v4365_v9 = vld [vmem:[#allocation3 + $0x148] sm:$0xff]  }
 0x14d   :  { %v4831_v30 = vpack.c.bf16 %v295_v22, %v293_v13  ;;  %v4833_v14 = vpack.c.bf16 %v299_v24, %v297_v23  ;;  %v327_v15 = vshrl.u32 %v317_v12, 16  ;;  %v330_v16 = vshll.u32 %v317_v12, 16 }
 0x14e   :  { %v4835_v17 = vpack.c.bf16 %v296_v27, %v294_v26  ;;  %v4837_v18 = vpack.c.bf16 %v300_v29, %v298_v28  ;;  %v344_v19 = vshrl.u32 %v318_v25, 16  ;;  %v347_v20 = vshll.u32 %v318_v25, 16  ;;  %v4367_v27 = vld [vmem:[#allocation3 + $0x108] sm:$0xff]   ;;  %v4368_v28 = vld [vmem:[#allocation3 + $0x180] sm:$0xff]  }
 0x14f   :  { %313 = vst [vmem:[#allocation2 + $0x10] sm:$0xff] %v4831_v30  ;;  %315 = vst [vmem:[#allocation2 + $0x40] sm:$0xff] %v4833_v14  ;;  %v378_v32 = vshrl.u32 %v322_v21, 16  ;;  %v381_v33 = vshll.u32 %v322_v21, 16  ;;  %v4845_v36 = vrot.slane %v327_v15, 6  ;;  %v4847_v37 = vrot.slane %v330_v16, 7 }
 0x150   :  { %314 = vst [vmem:[#allocation2 + $0x18] sm:$0xff] %v4835_v17  ;;  %316 = vst [vmem:[#allocation2 + $0x48] sm:$0xff] %v4837_v18  ;;  %v346_v34 = vrot.slane %v344_v19, 6  ;;  %v349_v35 = vrot.slane %v347_v20, 7  ;;  %v364_v0 = vshll.u32 %v321_v44, 16  ;;  %v804_v5 = vshrl.u32 %v4835_v17, 16 }
 0x151   :  { %v4859_v46 = vrot.slane %v378_v32, 6  ;;  %v383_v47 = vrot.slane %v381_v33, 7  ;;  %v333_v51 = vor.u32 %v4847_v37, %v4845_v36  ;;  %v363_v19 = vrot.slane %v361_v59, 6  ;;  %v4369_v21 = vld [vmem:[#allocation3 + $0x150] sm:$0xff]   ;;  %v4370_v37 = vld [vmem:[#allocation3 + $0x1c8] sm:$0xff]  }
 0x152   :  { %v350_v50 = vor.u32 %v349_v35, %v346_v34  ;;  %v806_v16 = vrot.slane %v804_v5, 7  ;;  %v807_v33 = vshll.u32 %v4835_v17, 16  ;;  %v366_v34 = vrot.slane %v364_v0, 7  ;;  %v4383_v0 = vld [vmem:[#allocation3 + $0x128] sm:$0xff]  }
 0x153   :  { %v384_v29 = vor.u32 %v383_v47, %v4859_v46  ;;  %v4372_v46 = vld [vmem:[#allocation3 + $0x188] sm:$0xff]   ;;  %v802_v47 = vrot.slane %v800_v42, 7  ;;  %v4375_v42 = vld [vmem:[#allocation3 + $0x118] sm:$0xff]  }
 0x156   :  { %v319_v49 = vld [vmem:[#allocation2 + $0x10] sm:$0x7f]  ;;  %v4864_v53 = vld [vmem:[#allocation2 + $0x40] sm:$0x7f] }
 0x157   :  { %v320_v55 = vld [vmem:[#allocation2 + $0x18] sm:$0x7f]  ;;  %v335_v56 = vshrl.u32 %v319_v49, 16  ;;  %v338_v57 = vshll.u32 %v319_v49, 16  ;;  %v444_v58 = vrot.slane %v319_v49, 7  ;;  %v369_v22 = vshrl.u32 %v4864_v53, 16 }
 0x158   :  { %v447_v60 = vrot.slane %v320_v55, 7  ;;  %v324_v61 = vld [vmem:[#allocation2 + $0x48] sm:$0x7f]  ;;  %v352_v62 = vshrl.u32 %v320_v55, 16  ;;  %v355_v63 = vshll.u32 %v320_v55, 16  ;;  %v372_v26 = vshll.u32 %v4864_v53, 16 }
 0x159   :  { %v337_v1 = vrot.slane %v335_v56, 6  ;;  %v340_v2 = vrot.slane %v338_v57, 7  ;;  %v453_v4 = vrot.slane %v324_v61, 7  ;;  %v386_v10 = vshrl.u32 %v324_v61, 16  ;;  %v4376_v57 = vld [vmem:[#allocation3 + $0x190] sm:$0xff]  }
 0x15a   :  { %v448_v6 = vsel %vm442_vm2, %v446_v41, %v447_v60  ;;  %v354_v7 = vrot.slane %v352_v62, 6  ;;  %v357_v8 = vrot.slane %v355_v63, 7  ;;  %v445_v11 = vsel %vm442_vm2, %v443_v43, %v444_v58  ;;  %v4377_v58 = vld [vmem:[#allocation3 + $0x160] sm:$0xff]   ;;  %v4378_v60 = vld [vmem:[#allocation3 + $0x1d8] sm:$0xff]   ;;  %v4381_v62 = vld [vmem:[#allocation3 + $0x168] sm:$0xff]  }
 0x15b   :  { %620 = vmatprep.mubr.bf16.mxu1 %v448_v6  ;;  %v341_v12 = vor.u32 %v340_v2, %v337_v1  ;;  %v389_v13 = vshll.u32 %v324_v61, 16  ;;  %v454_v23 = vsel %vm442_vm2, %v452_v45, %v453_v4  ;;  %v388_v25 = vrot.slane %v386_v10, 6  ;;  %v4371_v45 = vld [vmem:[#allocation3 + $0x110] sm:$0xff]   ;;  %v4380_v61 = vld [vmem:[#allocation3 + $0x198] sm:$0xff]   ;;  %v4382_v63 = vld [vmem:[#allocation3 + $0x1e0] sm:$0xff]  }
 0x15c   :  { %621 = vmatmul.mubr.bf16.vlgmr.msra.gmra.mrb[0].mxu1 %v445_v11  ;;  %v358_v24 = vor.u32 %v357_v8, %v354_v7  ;;  %v450_v32 = vrot.slane %v4864_v53, 7  ;;  %v371_v41 = vrot.slane %v369_v22, 6  ;;  %v374_v43 = vrot.slane %v372_v26, 7  ;;  %v4374_v53 = vld [vmem:[#allocation3 + $0x1d0] sm:$0xff]   ;;  %v4384_v1 = vld [vmem:[#allocation3 + $0x1a0] sm:$0xff]   ;;  %v4388_v8 = vld [vmem:[#allocation3 + $0x1a8] sm:$0xff]  }
 0x15d   :  { %3969 = vmatpush3.bf16.msra.mxu1 %v4364_v3  ;;  %628 = vmatprep.mubr.bf16.mxu1 %v454_v23  ;;  %v391_v15 = vrot.slane %v389_v13, 7  ;;  %v342_v35 = vsel %vm325_vm3, %v333_v51, %v341_v12  ;;  %v809_v49 = vor.u32 %v807_v33, %v806_v16  ;;  %v367_v55 = vor.u32 %v366_v34, %v363_v19  ;;  %v4385_v2 = vld [vmem:[#allocation3 + $0x170] sm:$0xff]   ;;  %v4386_v3 = vld [vmem:[#allocation3 + $0x1e8] sm:$0xff]   ;;  %v4391_v23 = vld [vmem:[#allocation3 + $0x138] sm:$0xff]  }
 0x15e   :  { %v359_v20 = vsel %vm325_vm3, %v350_v50, %v358_v24  ;;  %3970 = vmatprep.subr.bf16.mxu1 %v4365_v9  ;;  %v4373_v50 = vld [vmem:[#allocation3 + $0x158] sm:$0xff]   ;;  %v451_v51 = vsel %vm442_vm2, %v449_v48, %v450_v32  ;;  %v375_v56 = vor.u32 %v374_v43, %v371_v41  ;;  %v4379_v48 = vld [vmem:[#allocation3 + $0x120] sm:$0xff]   ;;  %v792_v4 = vshrl.u32 %v4831_v30, 16  ;;  %v4387_v7 = vld [vmem:[#allocation3 + $0x130] sm:$0xff]  }
 0x15f   :  { %765 = vmatprep.mubr.bf16.mxu0 %v359_v20  ;;  %v392_v36 = vor.u32 %v391_v15, %v388_v25  ;;  %v810_v31 = vsel %vm786_vm4, %v802_v47, %v809_v49  ;;  %v828_v6 = vshrl.u32 %v4837_v18, 16  ;;  %v4389_v9 = vld [vmem:[#allocation3 + $0x178] sm:$0xff]   ;;  %v4390_v10 = vld [vmem:[#allocation3 + $0x1f0] sm:$0xff]   ;;  %v788_v11 = vshrl.u32 %v4849_v38, 16  ;;  %v1206_v20 = vld [vmem:[#allocation2 + $0x28] sm:$0x1] }
 0x160   :  { %766 = vmatmul.mubr.bf16.vlgmr.msra.gmra.mrb[8].mxu0 %v342_v35  ;;  %v376_v59 = vsel %vm325_vm3, %v367_v55, %v375_v56  ;;  %v794_v12 = vrot.slane %v792_v4, 7  ;;  %v824_v13 = vshrl.u32 %v4851_v39, 16  ;;  %v4392_v24 = vld [vmem:[#allocation3 + $0x1b0] sm:$0xff]   ;;  %v795_v25 = vshll.u32 %v4831_v30, 16  ;;  %v4393_v26 = vld [vmem:[#allocation3 + $0x1f8] sm:$0xff]   ;;  %v4398_v32 = vld [vmem:[#allocation3 + $0x2c0] sm:$0xff]  }
 0x161   :  { %3971 = vmatpush3.bf16.msra.mxu1 %v4367_v27  ;;  %3997 = vmatpush3.bf16.msra.mxu0 %v4368_v28  ;;  %v393_v44 = vsel %vm325_vm3, %v384_v29, %v392_v36  ;;  %v830_v22 = vrot.slane %v828_v6, 7  ;;  %v4394_v27 = vld [vmem:[#allocation3 + $0x240] sm:$0xff]   ;;  %v831_v28 = vshll.u32 %v4837_v18, 16  ;;  %v790_v29 = vrot.slane %v788_v11, 7  ;;  %v4395_v39 = vld [vmem:[#allocation3 + $0x1b8] sm:$0xff]   ;;  %v4397_v35 = vld [vmem:[#allocation3 + $0x248] sm:$0xff]  }
 0x162   :  { %773 = vmatprep.mubr.bf16.mxu0 %v393_v44  ;;  %3972 = vmatprep.subr.bf16.mxu1 %v4369_v21  ;;  %v797_v15 = vor.u32 %v795_v25, %v794_v12  ;;  %v816_v38 = vshrl.u32 %v4833_v14, 16  ;;  %v826_v16 = vrot.slane %v824_v13, 7  ;;  %v4396_v21 = vld [vmem:[#allocation3 + $0x200] sm:$0xff]   ;;  %v812_v36 = vshrl.u32 %v4853_v40, 16  ;;  %v4399_v47 = vld [vmem:[#allocation3 + $0x208] sm:$0xff]   ;;  %v4419_v11 = vld [vmem:[#allocation3 + $0x230] sm:$0xff]  }
 0x163   :  { %3998 = vmatprep.subr.bf16.mxu0 %v4370_v37  ;;  %v833_v19 = vor.u32 %v831_v28, %v830_v22  ;;  %v1229_v43 = vrot.slane %v807_v33, 1  ;;  %v1232_v44 = vshll.u32 %v1206_v20, 16  ;;  %v4402_v49 = vld [vmem:[#allocation3 + $0x2c8] sm:$0xff]   ;;  %v4907_v56 = vld [vmem:[#allocation2 + $0x18] sm:$0xfe]  ;;  %v4422_v12 = vld [vmem:[#allocation3 + $0x2f0] sm:$0xff]  }
 0x164   :  { %629 = vmatmul.mubr.bf16.gmra.mrb[4].mxu1 %v451_v51  ;;  %v798_v34 = vsel %vm786_vm4, %v790_v29, %v797_v15  ;;  %v818_v37 = vrot.slane %v816_v38, 7  ;;  %v4401_v51 = vld [vmem:[#allocation3 + $0x250] sm:$0xff]   ;;  %v4404_v55 = vld [vmem:[#allocation3 + $0x288] sm:$0xff]   ;;  %v1205_v13 = vld [vmem:[#allocation2 + $0x20] sm:$0x1] }
 0x165   :  { %3973 = vmatpush3.bf16.msra.mxu1 %v4371_v45  ;;  %3999 = vmatpush3.bf16.msra.mxu0 %v4372_v46  ;;  %v834_v41 = vsel %vm786_vm4, %v826_v16, %v833_v19  ;;  %v4400_v45 = vld [vmem:[#allocation3 + $0x280] sm:$0xff]   ;;  %v819_v46 = vshll.u32 %v4833_v14, 16  ;;  %v1234_v33 = vrot.slane %v1232_v44, 1  ;;  %v4415_v4 = vld [vmem:[#allocation3 + $0x228] sm:$0xff]   ;;  %v4421_v22 = vld [vmem:[#allocation3 + $0x278] sm:$0xff]  }
 0x166   :  { %1000 = vmatprep.mubr.bf16.mxu1 %v810_v31  ;;  %3974 = vmatprep.subr.bf16.mxu1 %v4373_v50  ;;  %v814_v50 = vrot.slane %v812_v36, 7  ;;  %v4403_v31 = vld [vmem:[#allocation3 + $0x210] sm:$0xff]   ;;  %v4418_v6 = vld [vmem:[#allocation3 + $0x2e8] sm:$0xff]   ;;  %v1207_v29 = vld [vmem:[#allocation2 + $0x40] sm:$0xff] }
 0x167   :  { %4000 = vmatprep.subr.bf16.mxu0 %v4374_v53  ;;  %v821_v40 = vor.u32 %v819_v46, %v818_v37  ;;  %v1230_v53 = vor.u32 %v1229_v43, %v804_v5  ;;  %v1463_v5 = vrot.slane %v1206_v20, 1  ;;  %v1658_v15 = vld [vmem:[#allocation2 + $0x28] sm:$0x3]  ;;  %v4423_v38 = vld [vmem:[#allocation3 + $0x238] sm:$0xff]   ;;  %v4426_v20 = vld [vmem:[#allocation3 + $0x340] sm:$0xff]   ;;  %v1239_v36 = vshll.u32 %v1207_v29, 16 }
 0x168   :  { %774 = vmatmul.mubr.bf16.gmra.mrb[12].mxu0 %v376_v59  ;;  %v4407_v59 = vld [vmem:[#allocation3 + $0x218] sm:$0xff]   ;;  %v1688_v37 = vshrl.u32 %v1658_v15, 16  ;;  %v4916_v44 = vld [vmem:[#allocation2 + $0x48] sm:$0xfe]  ;;  %v1683_v46 = vshll.u32 %v4907_v56, 16 }
 0x169   :  { %3975 = vmatpush3.bf16.msra.mxu1 %v4375_v42  ;;  %4001 = vmatpush3.bf16.msra.mxu0 %v4376_v57  ;;  %v4406_v42 = vld [vmem:[#allocation3 + $0x2d0] sm:$0xff]   ;;  %v822_v57 = vsel %vm786_vm4, %v814_v50, %v821_v40  ;;  %v4425_v19 = vld [vmem:[#allocation3 + $0x2f8] sm:$0xff]  }
 0x16a   :  { %1182 = vmatprep.mubr.bf16.mxu0 %v4835_v17  ;;  %3976 = vmatprep.subr.bf16.mxu1 %v4377_v58  ;;  %v4405_v58 = vld [vmem:[#allocation3 + $0x258] sm:$0xff]   ;;  %v1462_v17 = vrot.slane %v4907_v56, 1  ;;  %v1209_v50 = vld [vmem:[#allocation2 + $0x50] sm:$0x1] }
 0x16b   :  { %4002 = vmatprep.subr.bf16.mxu0 %v4378_v60  ;;  %v4410_v60 = vld [vmem:[#allocation3 + $0x2d8] sm:$0xff]  }
 0x16c   :  { %v4427_v43 = vld [vmem:[#allocation3 + $0x2b8] sm:$0xff]  }
 0x16d   :  { %3977 = vmatpush3.bf16.msra.mxu1 %v4379_v48  ;;  %4003 = vmatpush3.bf16.msra.mxu0 %v4380_v61  ;;  %v4409_v48 = vld [vmem:[#allocation3 + $0x260] sm:$0xff]   ;;  %v1464_v61 = vsel %vm1458_vm6, %v1462_v17, %v1463_v5  ;;  %v1685_v17 = vrot.slane %v1683_v46, 2 }
 0x16e   :  { %3978 = vmatprep.subr.bf16.mxu1 %v4381_v62  ;;  %4004 = vmatprep.subr.bf16.mxu0 %v4382_v63  ;;  %v4412_v62 = vld [vmem:[#allocation3 + $0x298] sm:$0xff]   ;;  %v4411_v63 = vld [vmem:[#allocation3 + $0x220] sm:$0xff]  }
 0x171   :  { %3979 = vmatpush3.bf16.msra.mxu1 %v4383_v0  ;;  %4005 = vmatpush3.bf16.msra.mxu0 %v4384_v1  ;;  %v4414_v0 = vld [vmem:[#allocation3 + $0x2e0] sm:$0xff]   ;;  %v4413_v1 = vld [vmem:[#allocation3 + $0x268] sm:$0xff]  }
 0x172   :  { %3980 = vmatprep.subr.bf16.mxu1 %v4385_v2  ;;  %4006 = vmatprep.subr.bf16.mxu0 %v4386_v3  ;;  %v4416_v2 = vld [vmem:[#allocation3 + $0x2a0] sm:$0xff]   ;;  %v1203_v3 = vld [vmem:[#allocation2 + $0x10] sm:$0xff] }
 0x173   :  { %v1213_v16 = vshrl.u32 %v1203_v3, 16 }
 0x175   :  { %3981 = vmatpush3.bf16.msra.mxu1 %v4387_v7  ;;  %4007 = vmatpush3.bf16.msra.mxu0 %v4388_v8  ;;  %v1208_v7 = vld [vmem:[#allocation2 + $0x48] sm:$0xff]  ;;  %v1215_v8 = vshll.u32 %v1203_v3, 16  ;;  %v4432_v3 = vld [vmem:[#allocation3 + $0x310] sm:$0xff]  }
 0x176   :  { %3982 = vmatprep.subr.bf16.mxu1 %v4389_v9  ;;  %4008 = vmatprep.subr.bf16.mxu0 %v4390_v10  ;;  %v4420_v9 = vld [vmem:[#allocation3 + $0x2a8] sm:$0xff]   ;;  %v1251_v10 = vshll.u32 %v1208_v7, 16 }
 0x177   :  { %v1217_v25 = vrot.slane %v1215_v8, 1 }
 0x178   :  { %v1253_v28 = vrot.slane %v1251_v10, 1 }
 0x179   :  { %3983 = vmatpush3.bf16.msra.mxu1 %v4391_v23  ;;  %4009 = vmatpush3.bf16.msra.mxu0 %v4392_v24  ;;  %v1220_v23 = vshll.u32 %v1205_v13, 16  ;;  %v1210_v24 = vld [vmem:[#allocation2 + $0x58] sm:$0x1] }
 0x17a   :  { %4010 = vmatprep.subr.bf16.mxu0 %v4393_v26  ;;  %4024 = vmatprep.subr.bf16.mxu1 %v4394_v27  ;;  %v1256_v26 = vshll.u32 %v1210_v24, 16  ;;  %v4424_v27 = vld [vmem:[#allocation3 + $0x2b0] sm:$0xff]  }
 0x17c   :  { %1001 = vmatmul.mubr.bf16.vlgmr.msra.gmra.mrb[8].mxu1 %v798_v34  ;;  %v1258_v34 = vrot.slane %v1256_v26, 1 }
 0x17d   :  { %1008 = vmatprep.mubr.bf16.mxu1 %v834_v41  ;;  %4011 = vmatpush3.bf16.msra.mxu0 %v4395_v39  ;;  %v1222_v39 = vrot.slane %v1220_v23, 1  ;;  %v4438_v23 = vld [vmem:[#allocation3 + $0x328] sm:$0xff]  }
 0x17e   :  { %4025 = vmatpush3.bf16.msra.mxu1 %v4396_v21  ;;  %4052 = vmatprep.subr.bf16.mxu0 %v4398_v32  ;;  %v1249_v21 = vshrl.u32 %v1208_v7, 16  ;;  %v1218_v32 = vor.u32 %v1217_v25, %v1213_v16  ;;  %v4433_v7 = vld [vmem:[#allocation3 + $0x358] sm:$0xff]   ;;  %v4439_v25 = vld [vmem:[#allocation3 + $0x370] sm:$0xff]  }
 0x17f   :  { %4026 = vmatprep.subr.bf16.mxu1 %v4397_v35  ;;  %v4914_v35 = vld [vmem:[#allocation2 + $0x10] sm:$0xfe] }
 0x180   :  { %1183 = vmatmul.mubr.bf16.vlgmr.msra.gmra.mrb[16].mxu0 %v4831_v30  ;;  %v1235_v30 = vsel %vm1211_vm5, %v1230_v53, %v1234_v33  ;;  %v1254_v41 = vor.u32 %v1253_v28, %v1249_v21  ;;  %v1459_v40 = vrot.slane %v4914_v35, 1  ;;  %v4429_v53 = vld [vmem:[#allocation3 + $0x348] sm:$0xff]   ;;  %v1469_v33 = vrot.slane %v1210_v24, 1  ;;  %v1660_v24 = vld [vmem:[#allocation2 + $0x58] sm:$0x3] }
 0x181   :  { %1190 = vmatprep.mubr.bf16.mxu0 %v4837_v18  ;;  %4053 = vmatpush3.bf16.msra.mxu0 %v4400_v45  ;;  %v4408_v18 = vld [vmem:[#allocation3 + $0x290] sm:$0xff]   ;;  %v1680_v45 = vshrl.u32 %v4907_v56, 16  ;;  %v1663_v28 = vshrl.u32 %v4914_v35, 16  ;;  %v1722_v16 = vshrl.u32 %v1660_v24, 16 }
 0x182   :  { %4027 = vmatpush3.bf16.msra.mxu1 %v4399_v47  ;;  %4054 = vmatprep.subr.bf16.mxu0 %v4402_v49  ;;  %v1691_v47 = vshll.u32 %v1658_v15, 16  ;;  %v4428_v49 = vld [vmem:[#allocation3 + $0x300] sm:$0xff]   ;;  %v1259_v56 = vsel %vm1211_vm5, %v1254_v41, %v1258_v34  ;;  %v1714_v15 = vshrl.u32 %v4916_v44, 16 }
 0x183   :  { %4028 = vmatprep.subr.bf16.mxu1 %v4401_v51  ;;  %v1460_v51 = vrot.slane %v1205_v13, 1  ;;  %v4437_v13 = vld [vmem:[#allocation3 + $0x368] sm:$0xff]   ;;  %v1665_v34 = vrot.slane %v1663_v28, 1 }
 0x184   :  { %1009 = vmatmul.mubr.bf16.gmra.mrb[12].mxu1 %v822_v57  ;;  %v1241_v57 = vrot.slane %v1239_v36, 1  ;;  %v1693_v5 = vrot.slane %v1691_v47, 2  ;;  %v1716_v41 = vrot.slane %v1714_v15, 1 }
 0x185   :  { %1425 = vmatprep.mubr.bf16.mxu1 %v1235_v30  ;;  %4055 = vmatpush3.bf16.msra.mxu0 %v4404_v55  ;;  %v1244_v55 = vshll.u32 %v1209_v50, 16  ;;  %v1682_v30 = vrot.slane %v1680_v45, 1  ;;  %v1724_v45 = vrot.slane %v1722_v16, 1 }
 0x186   :  { %4029 = vmatpush3.bf16.msra.mxu1 %v4403_v31  ;;  %4056 = vmatprep.subr.bf16.mxu0 %v4406_v42  ;;  %v1223_v31 = vsel %vm1211_vm5, %v1218_v32, %v1222_v39  ;;  %v1468_v42 = vrot.slane %v4916_v44, 1  ;;  %v4440_v39 = vld [vmem:[#allocation3 + $0x330] sm:$0xff]  }
 0x187   :  { %4030 = vmatprep.subr.bf16.mxu1 %v4405_v58  ;;  %v1690_v58 = vrot.slane %v1688_v37, 1  ;;  %v1659_v37 = vld [vmem:[#allocation2 + $0x50] sm:$0x3] }
 0x188   :  { %1191 = vmatmul.mubr.bf16.gmra.mrb[20].mxu0 %v4833_v14  ;;  %v4417_v14 = vld [vmem:[#allocation3 + $0x270] sm:$0xff]  }
 0x189   :  { %4057 = vmatpush3.bf16.msra.mxu0 %v4408_v18  ;;  %1636 = vmatprep.mubr.bf16.mxu0 %v1464_v61  ;;  %v4430_v18 = vld [vmem:[#allocation3 + $0x308] sm:$0xff]   ;;  %v1470_v61 = vsel %vm1458_vm6, %v1468_v42, %v1469_v33 }
 0x18a   :  { %4031 = vmatpush3.bf16.msra.mxu1 %v4407_v59  ;;  %4058 = vmatprep.subr.bf16.mxu0 %v4410_v60  ;;  %v1237_v59 = vshrl.u32 %v1207_v29, 16  ;;  %v1461_v60 = vsel %vm1458_vm6, %v1459_v40, %v1460_v51  ;;  %v1666_v29 = vshll.u32 %v4914_v35, 16  ;;  %v4442_v35 = vld [vmem:[#allocation3 + $0x338] sm:$0xff]   ;;  %v1708_v51 = vshll.u32 %v1659_v37, 16 }
 0x18b   :  { %4032 = vmatprep.subr.bf16.mxu1 %v4409_v48  ;;  %v4431_v48 = vld [vmem:[#allocation3 + $0x350] sm:$0xff]  }
 0x18c   :  { %v1668_v36 = vrot.slane %v1666_v29, 2 }
 0x18d   :  { %4059 = vmatpush3.bf16.msra.mxu0 %v4412_v62  ;;  %v1242_v62 = vor.u32 %v1241_v57, %v1237_v59 }
 0x18e   :  { %4033 = vmatpush3.bf16.msra.mxu1 %v4411_v63  ;;  %4060 = vmatprep.subr.bf16.mxu0 %v4414_v0  ;;  %v1246_v63 = vrot.slane %v1244_v55, 1  ;;  %v4926_v0 = vld [vmem:[#allocation2 + $0x40] sm:$0xfe] }
 0x18f   :  { %4034 = vmatprep.subr.bf16.mxu1 %v4413_v1  ;;  %v1686_v1 = vor.u32 %v1685_v17, %v1682_v30  ;;  %v1700_v40 = vshll.u32 %v4926_v0, 16 }
 0x191   :  { %4061 = vmatpush3.bf16.msra.mxu0 %v4416_v2  ;;  %v1694_v2 = vor.u32 %v1693_v5, %v1690_v58  ;;  %v1702_v57 = vrot.slane %v1700_v40, 2  ;;  %v1710_v58 = vrot.slane %v1708_v51, 2  ;;  %v4445_v51 = vld [vmem:[#allocation6 + $0xc0] sm:$0xff]  }
 0x192   :  { %4035 = vmatpush3.bf16.msra.mxu1 %v4415_v4  ;;  %4062 = vmatprep.subr.bf16.mxu0 %v4418_v6  ;;  %v1465_v4 = vrot.slane %v4926_v0, 1  ;;  %v1466_v6 = vrot.slane %v1209_v50, 1  ;;  %v1697_v50 = vshrl.u32 %v4926_v0, 16 }
 0x193   :  { %4036 = vmatprep.subr.bf16.mxu1 %v4417_v14  ;;  %v1247_v14 = vsel %vm1211_vm5, %v1242_v62, %v1246_v63  ;;  %v1695_v8 = vsel %vm1661_vm7, %v1686_v1, %v1694_v2 }
 0x194   :  { %v1467_v10 = vsel %vm1458_vm6, %v1465_v4, %v1466_v6  ;;  %v1699_v42 = vrot.slane %v1697_v50, 1 }
 0x195   :  { %4063 = vmatpush3.bf16.msra.mxu0 %v4420_v9  ;;  %v4434_v9 = vld [vmem:[#allocation3 + $0x318] sm:$0xff]  }
 0x196   :  { %4037 = vmatpush3.bf16.msra.mxu1 %v4419_v11  ;;  %4064 = vmatprep.subr.bf16.mxu0 %v4422_v12  ;;  %v4435_v11 = vld [vmem:[#allocation3 + $0x360] sm:$0xff]   ;;  %v1703_v30 = vor.u32 %v1702_v57, %v1699_v42  ;;  %v4447_v57 = vld [vmem:[#allocation6 + $0x48] sm:$0xff]  }
 0x197   :  { %4038 = vmatprep.subr.bf16.mxu1 %v4421_v22  ;;  %v4436_v12 = vld [vmem:[#allocation3 + $0x320] sm:$0xff]  }
 0x198   :  { %v1657_v22 = vld [vmem:[#allocation2 + $0x20] sm:$0x3] }
 0x199   :  { %4065 = vmatpush3.bf16.msra.mxu0 %v4424_v27  ;;  %v1671_v26 = vshrl.u32 %v1657_v22, 16  ;;  %v1674_v27 = vshll.u32 %v1657_v22, 16 }
 0x19a   :  { %4039 = vmatpush3.bf16.msra.mxu1 %v4423_v38  ;;  %4066 = vmatprep.subr.bf16.mxu0 %v4425_v19  ;;  %v1717_v38 = vshll.u32 %v4916_v44, 16  ;;  %v1725_v19 = vshll.u32 %v1660_v24, 16  ;;  %v1705_v44 = vshrl.u32 %v1659_v37, 16 }
 0x19b   :  { %4080 = vmatprep.subr.bf16.mxu1 %v4426_v20  ;;  %v4441_v20 = vld [vmem:[#allocation3 + $0x378] sm:$0xff]   ;;  %v1673_v21 = vrot.slane %v1671_v26, 1  ;;  %v1676_v32 = vrot.slane %v1674_v27, 2 }
 0x19c   :  { %v1727_v46 = vrot.slane %v1725_v19, 2  ;;  %v1707_v55 = vrot.slane %v1705_v44, 1  ;;  %v4444_v44 = vld [vmem:[#allocation6] sm:$0xff]  }
 0x19d   :  { %1426 = vmatmul.mubr.bf16.vlgmr.msra.gmra.mrb[16].mxu1 %v1223_v31  ;;  %4067 = vmatpush3.bf16.msra.mxu0 %v4427_v43  ;;  %v1719_v43 = vrot.slane %v1717_v38, 2  ;;  %v1677_v47 = vor.u32 %v1676_v32, %v1673_v21 }
 0x19e   :  { %1433 = vmatprep.mubr.bf16.mxu1 %v1259_v56  ;;  %4081 = vmatpush3.bf16.msra.mxu1 %v4428_v49  ;;  %v1669_v49 = vor.u32 %v1668_v36, %v1665_v34  ;;  %v1728_v33 = vor.u32 %v1727_v46, %v1724_v45  ;;  %v1711_v17 = vor.u32 %v1710_v58, %v1707_v55 }
 0x19f   :  { %4082 = vmatprep.subr.bf16.mxu1 %v4429_v53  ;;  %v1720_v53 = vor.u32 %v1719_v43, %v1716_v41 }
 0x1a0   :  { %1637 = vmatmul.mubr.bf16.vlgmr.msra.gmra.mrb[24].mxu0 %v1461_v60  ;;  %v1678_v31 = vsel %vm1661_vm7, %v1669_v49, %v1677_v47  ;;  %v1712_v5 = vsel %vm1661_vm7, %v1703_v30, %v1711_v17 }
 0x1a1   :  { %1644 = vmatprep.mubr.bf16.mxu0 %v1470_v61  ;;  %v1729_v56 = vsel %vm1661_vm7, %v1720_v53, %v1728_v33  ;;  %v4446_v33 = vld [vmem:[#allocation6 + $0x80] sm:$0xff]  }
 0x1a2   :  { %4083 = vmatpush3.bf16.msra.mxu1 %v4430_v18 }
 0x1a3   :  { %4084 = vmatprep.subr.bf16.mxu1 %v4431_v48 }
 0x1a5   :  { %1434 = vmatmul.mubr.bf16.gmra.mrb[20].mxu1 %v1247_v14 }
 0x1a6   :  { %4085 = vmatpush3.bf16.msra.mxu1 %v4432_v3  ;;  %1895 = vmatprep.mubr.bf16.mxu1 %v1695_v8 }
 0x1a7   :  { %4086 = vmatprep.subr.bf16.mxu1 %v4433_v7 }
 0x1a8   :  { %1645 = vmatmul.mubr.bf16.gmra.mrb[28].mxu0 %v1467_v10 }
 0x1aa   :  { %4087 = vmatpush3.bf16.msra.mxu1 %v4434_v9 }
 0x1ab   :  { %4088 = vmatprep.subr.bf16.mxu1 %v4435_v11 }
 0x1ae   :  { %4089 = vmatpush3.bf16.msra.mxu1 %v4436_v12 }
 0x1af   :  { %4090 = vmatprep.subr.bf16.mxu1 %v4437_v13 }
 0x1b2   :  { %4091 = vmatpush3.bf16.msra.mxu1 %v4438_v23 }
 0x1b3   :  { %4092 = vmatprep.subr.bf16.mxu1 %v4439_v25 }
 0x1b6   :  { %4093 = vmatpush3.bf16.msra.mxu1 %v4440_v39 }
 0x1b7   :  { %4094 = vmatprep.subr.bf16.mxu1 %v4441_v20 }
 0x1ba   :  { %4095 = vmatpush3.bf16.msra.mxu1 %v4442_v35  ;;  %v4443_v35 = vld [vmem:[#allocation6 + $0x40] sm:$0xff]  }
 0x1bb   :  { %4108 = vmatprep.subr.bf16.mxu0 %v4443_v35  ;;  %4130 = vmatprep.subr.bf16.mxu1 %v4445_v51 }
 0x1bc   :  { %4109 = vmatpush3.bf16.msra.mxu0 %v4444_v44 }
 0x1bd   :  { %1896 = vmatmul.mubr.bf16.vlgmr.msra.gmra.mrb[24].mxu1 %v1678_v31  ;;  %4110 = vmatprep.subr.bf16.mxu0 %v4447_v57 }
 0x1be   :  { %1903 = vmatprep.mubr.bf16.mxu1 %v1729_v56  ;;  %4131 = vmatpush3.bf16.msra.mxu1 %v4446_v33  ;;  %v4448_v56 = vld [vmem:[#allocation6 + $0x8] sm:$0xff]  }
 0x1c0   :  { %4111 = vmatpush3.bf16.msra.mxu0 %v4448_v56 }
 0x1c5   :  { %1904 = vmatmul.mubr.bf16.gmra.mrb[28].mxu1 %v1712_v5 }
 0x22f   :  { %v3928_v18 = vpop.f32.mrb[0].mxu1 }
 0x230   :  { %v3929_v59 = vpop.f32.mrb[1].mxu1 }
 0x231   :  { %v3930_v60 = vadd.f32 %v3929_v59, %v3928_v18  ;;  %v3931_v48 = vpop.f32.mrb[2].mxu1  ;;  %v4449_v18 = vld [vmem:[#allocation6 + $0xc8] sm:$0xff]  }
 0x232   :  { %v3932_v61 = vpop.f32.mrb[3].mxu1  ;;  %4132 = vmatprep.subr.bf16.mxu1 %v4449_v18 }
 0x233   :  { %v3933_v62 = vadd.f32 %v3932_v61, %v3931_v48  ;;  %v3956_v63 = vpop.f32.mrb[8].mxu0 }
 0x234   :  { %v3957_v0 = vpop.f32.mrb[9].mxu0 }
 0x235   :  { %v3958_v1 = vadd.f32 %v3957_v0, %v3956_v63  ;;  %v3959_v2 = vpop.f32.mrb[10].mxu0  ;;  %v4452_v63 = vld [vmem:[#allocation6 + $0x10] sm:$0xff]  }
 0x236   :  { %v3960_v3 = vpop.f32.mrb[11].mxu0  ;;  %v4453_v0 = vld [vmem:[#allocation6 + $0xd0] sm:$0xff]  }
 0x237   :  { %v768_v4 = vadd.f32 %v3958_v1, %v3930_v60  ;;  %v3961_v6 = vadd.f32 %v3960_v3, %v3959_v2  ;;  %v3934_v7 = vpop.f32.mrb[4].mxu1  ;;  %v4450_v60 = vld [vmem:[#allocation6 + $0x88] sm:$0xff]   ;;  %v4454_v1 = vld [vmem:[#allocation6 + $0x90] sm:$0xff]   ;;  %v4455_v2 = vld [vmem:[#allocation6 + $0x58] sm:$0xff]  }
 0x238   :  { %v3935_v14 = vpop.f32.mrb[5].mxu1  ;;  %4133 = vmatpush3.bf16.msra.mxu1 %v4450_v60 }
 0x239   :  { %v771_v8 = vadd.f32 %v3961_v6, %v3933_v62  ;;  %v3936_v9 = vadd.f32 %v3935_v14, %v3934_v7  ;;  %v3937_v10 = vpop.f32.mrb[6].mxu1  ;;  %v4451_v62 = vld [vmem:[#allocation6 + $0x50] sm:$0xff]   ;;  %4134 = vmatprep.subr.bf16.mxu1 %v4453_v0  ;;  %v4456_v6 = vld [vmem:[#allocation6 + $0x18] sm:$0xff]   ;;  %v4459_v7 = vld [vmem:[#allocation6 + $0x60] sm:$0xff]  }
 0x23a   :  { %v3938_v11 = vpop.f32.mrb[7].mxu1  ;;  %4112 = vmatprep.subr.bf16.mxu0 %v4451_v62  ;;  %v4458_v14 = vld [vmem:[#allocation6 + $0x98] sm:$0xff]   ;;  %v3771_v0 = vld [vmem:[%s5060_s5] ss:$0 sm:$0xff]  ;;  %s4691_s5 = smov [#allocation9]  }
 0x23b   :  { %v3939_v12 = vadd.f32 %v3938_v11, %v3937_v10  ;;  %v3962_v13 = vpop.f32.mrb[12].mxu0  ;;  %4113 = vmatpush3.bf16.msra.mxu0 %v4452_v63  ;;  %v4463_v10 = vld [vmem:[#allocation6 + $0x68] sm:$0xff]   ;;  %v4462_v11 = vld [vmem:[#allocation6 + $0xa0] sm:$0xff]   ;;  %s3636_s27 = sshll.u32 %s4691_s5, 4  ;;  %s3637_s27 = int_to_ptr.vmem [resolvable:$true] %s3636_s27 }
 0x23c   :  { %v3963_v22 = vpop.f32.mrb[13].mxu0  ;;  %4114 = vmatprep.subr.bf16.mxu0 %v4455_v2  ;;  %4135 = vmatpush3.bf16.msra.mxu1 %v4454_v1  ;;  %s4631_s4 = scalar_lea.vmem %s3637_s27, 32  ;;  %p4636_p3 = scmp.lt.s32.totalorder %s3637_s27, %s3637_s27 }
 0x23d   :  { %v3964_v23 = vadd.f32 %v3963_v22, %v3962_v13  ;;  %v3965_v24 = vpop.f32.mrb[14].mxu0  ;;  %v4464_v13 = vld [vmem:[#allocation6 + $0x28] sm:$0xff]   ;;  %v4467_v22 = vld [vmem:[#allocation6 + $0x70] sm:$0xff]   ;;  %p4632_p2 = scmp.ne.s32.totalorder %s3637_s27, %s4631_s4  ;;  %p4637_p4 = scmp.lt.s32.totalorder %s4631_s4, %s4631_s4 }
 0x23e   :  { %v3966_v25 = vpop.f32.mrb[15].mxu0 }
 0x23f   :  { %v776_v26 = vadd.f32 %v3964_v23, %v3936_v9  ;;  %v3967_v27 = vadd.f32 %v3966_v25, %v3965_v24  ;;  %4115 = vmatpush3.bf16.msra.mxu0 %v4456_v6  ;;  %v4460_v9 = vld [vmem:[#allocation6 + $0x20] sm:$0xff]   ;;  %v4466_v23 = vld [vmem:[#allocation6 + $0xa8] sm:$0xff]   ;;  %v4469_v24 = vld [vmem:[#allocation6 + $0xf0] sm:$0xff]   ;;  %p4638_p5 = por %p4637_p4, %p4636_p3 }
 0x240   :  { %4116 = vmatprep.subr.bf16.mxu0 %v4459_v7  ;;  %v4468_v25 = vld [vmem:[#allocation6 + $0x30] sm:$0xff]  }
 0x241   :  { %v779_v28 = vadd.f32 %v3967_v27, %v3939_v12  ;;  %v4465_v12 = vld [vmem:[#allocation6 + $0xe8] sm:$0xff]   ;;  %p4639_p6 = pnand %p4638_p5, %p4632_p2 }
 0x243   :  { %4117 = vmatpush3.bf16.msra.mxu0 %v4460_v9 }
 0x244   :  { %4118 = vmatprep.subr.bf16.mxu0 %v4463_v10 }
 0x247   :  { %4119 = vmatpush3.bf16.msra.mxu0 %v4464_v13 }
 0x248   :  { %4120 = vmatprep.subr.bf16.mxu0 %v4467_v22 }
 0x24b   :  { %4121 = vmatpush3.bf16.msra.mxu0 %v4468_v25 }
 0x24f   :  { %v3984_v29 = vpop.f32.mrb[8].mxu1 }
 0x250   :  { %v3985_v15 = vpop.f32.mrb[9].mxu1 }
 0x251   :  { %v3986_v38 = vadd.f32 %v3985_v15, %v3984_v29  ;;  %v3987_v16 = vpop.f32.mrb[10].mxu1  ;;  %v4473_v15 = vld [vmem:[#allocation6 + $0xf8] sm:$0xff]  }
 0x252   :  { %v3988_v19 = vpop.f32.mrb[11].mxu1 }
 0x253   :  { %v1017_v39 = vadd.f32 %v3986_v38, %v768_v4  ;;  %v3989_v20 = vadd.f32 %v3988_v19, %v3987_v16  ;;  %v4012_v21 = vpop.f32.mrb[16].mxu0  ;;  %v4457_v4 = vld [vmem:[#allocation6 + $0xd8] sm:$0xff]  }
 0x254   :  { %v4013_v32 = vpop.f32.mrb[17].mxu0  ;;  %4136 = vmatprep.subr.bf16.mxu1 %v4457_v4  ;;  %v4472_v19 = vld [vmem:[#allocation6 + $0x38] sm:$0xff]  }
 0x255   :  { %v1018_v34 = vadd.f32 %v3989_v20, %v771_v8  ;;  %v4014_v36 = vadd.f32 %v4013_v32, %v4012_v21  ;;  %v4015_v37 = vpop.f32.mrb[18].mxu0  ;;  %v4461_v8 = vld [vmem:[#allocation6 + $0xe0] sm:$0xff]   ;;  %4137 = vmatpush3.bf16.msra.mxu1 %v4458_v14 }
 0x256   :  { %v4016_v41 = vpop.f32.mrb[19].mxu0  ;;  %4138 = vmatprep.subr.bf16.mxu1 %v4461_v8  ;;  %v4475_v21 = vld [vmem:[#allocation6 + $0x140] sm:$0xff]  }
 0x257   :  { %v4941_v43 = vadd.f32 %v4014_v36, %v1017_v39  ;;  %v4017_v45 = vadd.f32 %v4016_v41, %v4015_v37  ;;  %v3990_v46 = vpop.f32.mrb[12].mxu1  ;;  %v4474_v37 = vld [vmem:[#allocation6 + $0xb8] sm:$0xff]  }
 0x258   :  { %v3991_v47 = vpop.f32.mrb[13].mxu1 }
 0x259   :  { %v4943_v49 = vadd.f32 %v4017_v45, %v1018_v34  ;;  %v3992_v50 = vadd.f32 %v3991_v47, %v3990_v46  ;;  %v3993_v40 = vpop.f32.mrb[14].mxu1  ;;  %4139 = vmatpush3.bf16.msra.mxu1 %v4462_v11  ;;  %v4477_v46 = vld [vmem:[#allocation6 + $0x1c0] sm:$0xff]  }
 0x25a   :  { %v3994_v53 = vpop.f32.mrb[15].mxu1  ;;  %4140 = vmatprep.subr.bf16.mxu1 %v4465_v12 }
 0x25b   :  { %v1019_v55 = vadd.f32 %v3992_v50, %v776_v26  ;;  %v3995_v31 = vadd.f32 %v3994_v53, %v3993_v40  ;;  %v4018_v42 = vpop.f32.mrb[20].mxu0  ;;  %v4471_v26 = vld [vmem:[#allocation6 + $0x78] sm:$0xff]  }
 0x25c   :  { %v4019_v58 = vpop.f32.mrb[21].mxu0  ;;  %4122 = vmatprep.subr.bf16.mxu0 %v4471_v26 }
 0x25d   :  { %v1020_v30 = vadd.f32 %v3995_v31, %v779_v28  ;;  %v4020_v17 = vadd.f32 %v4019_v58, %v4018_v42  ;;  %v4021_v5 = vpop.f32.mrb[22].mxu0  ;;  %4141 = vmatpush3.bf16.msra.mxu1 %v4466_v23  ;;  %v4470_v28 = vld [vmem:[#allocation6 + $0xb0] sm:$0xff]   ;;  %4123 = vmatpush3.bf16.msra.mxu0 %v4472_v19 }
 0x25e   :  { %v4022_v59 = vpop.f32.mrb[23].mxu0  ;;  %4142 = vmatprep.subr.bf16.mxu1 %v4469_v24  ;;  %4152 = vmatprep.subr.bf16.mxu0 %v4475_v21 }
 0x25f   :  { %v4945_v48 = vadd.f32 %v4020_v17, %v1019_v55  ;;  %v4023_v61 = vadd.f32 %v4022_v59, %v4021_v5 }
 0x261   :  { %v4947_v3 = vadd.f32 %v4023_v61, %v1020_v30  ;;  %4143 = vmatpush3.bf16.msra.mxu1 %v4470_v28 }
 0x262   :  { %4144 = vmatprep.subr.bf16.mxu1 %v4473_v15 }
 0x265   :  { %4145 = vmatpush3.bf16.msra.mxu1 %v4474_v37 }
 0x266   :  { %4174 = vmatprep.subr.bf16.mxu1 %v4477_v46 }
 0x270   :  { %v4040_v27 = vpop.f32.mrb[16].mxu1 }
 0x271   :  { %v4041_v29 = vpop.f32.mrb[17].mxu1 }
 0x272   :  { %v4042_v38 = vadd.f32 %v4041_v29, %v4040_v27  ;;  %v4043_v16 = vpop.f32.mrb[18].mxu1 }
 0x273   :  { %v4044_v39 = vpop.f32.mrb[19].mxu1  ;;  %v4068_v20 = vpop.f32.mrb[24].mxu0 }
 0x274   :  { %v1442_v32 = vadd.f32 %v4042_v38, %v4941_v43  ;;  %v4045_v34 = vadd.f32 %v4044_v39, %v4043_v16  ;;  %v4069_v36 = vpop.f32.mrb[25].mxu0 }
 0x275   :  { %v4070_v41 = vadd.f32 %v4069_v36, %v4068_v20  ;;  %v4071_v45 = vpop.f32.mrb[26].mxu0 }
 0x276   :  { %v1443_v35 = vadd.f32 %v4045_v34, %v4943_v49  ;;  %v4072_v47 = vpop.f32.mrb[27].mxu0 }
 0x277   :  { %v1653_v44 = vadd.f32 %v4070_v41, %v1442_v32  ;;  %v4073_v50 = vadd.f32 %v4072_v47, %v4071_v45 }
 0x278   :  { %v4046_v40 = vpop.f32.mrb[20].mxu1 }
 0x279   :  { %v1654_v51 = vadd.f32 %v4073_v50, %v1443_v35  ;;  %v4047_v53 = vpop.f32.mrb[21].mxu1 }
 0x27a   :  { %v4048_v43 = vadd.f32 %v4047_v53, %v4046_v40  ;;  %v4049_v33 = vpop.f32.mrb[22].mxu1 }
 0x27b   :  { %v4050_v55 = vpop.f32.mrb[23].mxu1  ;;  %v4074_v31 = vpop.f32.mrb[28].mxu0 }
 0x27c   :  { %v1444_v42 = vadd.f32 %v4048_v43, %v4945_v48  ;;  %v4051_v57 = vadd.f32 %v4050_v55, %v4049_v33  ;;  %v4075_v58 = vpop.f32.mrb[29].mxu0 }
 0x27d   :  { %v4076_v56 = vadd.f32 %v4075_v58, %v4074_v31  ;;  %v4077_v49 = vpop.f32.mrb[30].mxu0  ;;  %v4688_v58 = vmov 1966171168  }
 0x27e   :  { %v1445_v30 = vadd.f32 %v4051_v57, %v4947_v3  ;;  %v4078_v17 = vpop.f32.mrb[31].mxu0 }
 0x27f   :  { %v1655_v5 = vadd.f32 %v4076_v56, %v1444_v42  ;;  %v4079_v18 = vadd.f32 %v4078_v17, %v4077_v49  ;;  %v1989_v56 = vunpack.c.l.s4 %v4688_v58  ;;  %v1931_v49 = vld [vmem:[%s5061_s6] sm:$0x1]  ;;  %v4495_v58 = vld [vmem:[#allocation6 + $0x168] sm:$0xff]  }
 0x281   :  { %v1656_v59 = vadd.f32 %v4079_v18, %v1445_v30 }
 0x290   :  { %v4096_v60 = vpop.f32.mrb[24].mxu1 }
 0x291   :  { %v4097_v61 = vpop.f32.mrb[25].mxu1 }
 0x292   :  { %v4098_v62 = vadd.f32 %v4097_v61, %v4096_v60  ;;  %v4099_v63 = vpop.f32.mrb[26].mxu1 }
 0x293   :  { %v4100_v1 = vpop.f32.mrb[27].mxu1 }
 0x294   :  { %v1912_v48 = vadd.f32 %v4098_v62, %v1653_v44  ;;  %v4101_v2 = vadd.f32 %v4100_v1, %v4099_v63 }
 0x296   :  { %v1923_v4 = vadd.f32 %v3771_v0, %v1912_v48  ;;  %v1913_v6 = vadd.f32 %v4101_v2, %v1654_v51 }
 0x298   :  { %v1924_v7 = vadd.f32 %v3771_v0, %v1913_v6  ;;  %v4102_v14 = vpop.f32.mrb[28].mxu1  ;;  %v1927_v8 = vmax.f32 %v1923_v4, 0.0 }
 0x299   :  { %v4103_v3 = vpop.f32.mrb[29].mxu1 }
 0x29a   :  { %v1928_v9 = vmax.f32 %v1924_v7, 0.0  ;;  %v4104_v10 = vadd.f32 %v4103_v3, %v4102_v14  ;;  %v4105_v11 = vpop.f32.mrb[30].mxu1 }
 0x29b   :  { %v4106_v12 = vpop.f32.mrb[31].mxu1 }
 0x29c   :  { %v1933_v13 = vadd.f32 %v1928_v9, %v1927_v8  ;;  %v1914_v22 = vadd.f32 %v4104_v10, %v1655_v5  ;;  %v4107_v23 = vadd.f32 %v4106_v12, %v4105_v11  ;;  %v1990_v5 = vunpack.c.0.s8 %v1989_v56  ;;  %v4494_v56 = vld [vmem:[#allocation6 + $0x1a0] sm:$0xff]  }
 0x29e   :  { %v1925_v24 = vadd.f32 %v3771_v0, %v1914_v22  ;;  %v1915_v25 = vadd.f32 %v4107_v23, %v1656_v59  ;;  %v3772_v59 = vld [vmem:[%s5062_s7] ss:$0 sm:$0xff] }
 0x2a0   :  { %v1929_v26 = vmax.f32 %v1925_v24, 0.0  ;;  %v1926_v27 = vadd.f32 %v3771_v0, %v1915_v25  ;;  %v1993_v0 = vsub.s32 %v1990_v5, %v4815_v52  ;;  %v4498_v5 = vld [vmem:[#allocation6 + $0x1a8] sm:$0xff]  }
 0x2a2   :  { %v1934_v28 = vadd.f32 %v1933_v13, %v1929_v26  ;;  %v1930_v29 = vmax.f32 %v1926_v27, 0.0 }
 0x2a4   :  { %v1935_v15 = vadd.f32 %v1934_v28, %v1930_v29 }
 0x2a6   :  { %v1936_v38 = vrot.slane %v1935_v15, 4 }
 0x2a8   :  { %v1937_v16 = vadd.f32 %v1936_v38, %v1935_v15 }
 0x2aa   :  { %v1938_v19 = vrot.slane %v1937_v16, 2 }
 0x2ac   :  { %v1939_v39 = vadd.f32 %v1938_v19, %v1937_v16  ;;  %v4476_v16 = vld [vmem:[#allocation6 + $0x100] sm:$0xff]  }
 0x2ae   :  { %v1940_v20 = vrot.slane %v1939_v39, 1 }
 0x2b0   :  { %v1941_v21 = vadd.f32 %v1940_v20, %v1939_v39 }
 0x2b2   :  { %v1942_v32 = vmul.f32 0.03125, %v1941_v21 }
 0x2b4   :  { %v1943_v34 = vsub.f32 %v1927_v8, %v1942_v32  ;;  %v1944_v36 = vsub.f32 %v1928_v9, %v1942_v32  ;;  %v1945_v37 = vsub.f32 %v1929_v26, %v1942_v32  ;;  %v1946_v41 = vsub.f32 %v1930_v29, %v1942_v32  ;;  %v4478_v32 = vld [vmem:[#allocation6 + $0x180] sm:$0xff]  }
 0x2b6   :  { %v1947_v45 = vmul.f32 %v1943_v34, %v1943_v34  ;;  %v1948_v46 = vmul.f32 %v1944_v36, %v1944_v36  ;;  %v1949_v35 = vmul.f32 %v1945_v37, %v1945_v37  ;;  %v1950_v44 = vmul.f32 %v1946_v41, %v1946_v41 }
 0x2b8   :  { %v1951_v47 = vadd.f32 %v1948_v46, %v1947_v45  ;;  %v4481_v45 = vld [vmem:[#allocation6 + $0x1c8] sm:$0xff]  }
 0x2b9   :  { %v4480_v46 = vld [vmem:[#allocation6 + $0x108] sm:$0xff]  }
 0x2ba   :  { %v1952_v50 = vadd.f32 %v1951_v47, %v1949_v35  ;;  %v4483_v47 = vld [vmem:[#allocation6 + $0x150] sm:$0xff]  }
 0x2bc   :  { %v1953_v40 = vadd.f32 %v1952_v50, %v1950_v44  ;;  %v4482_v44 = vld [vmem:[#allocation6 + $0x188] sm:$0xff]   ;;  %v4485_v50 = vld [vmem:[#allocation6 + $0x1d0] sm:$0xff]  }
 0x2be   :  { %v1954_v51 = vrot.slane %v1953_v40, 4 }
 0x2c0   :  { %v1955_v53 = vadd.f32 %v1954_v51, %v1953_v40  ;;  %v4484_v40 = vld [vmem:[#allocation6 + $0x110] sm:$0xff]   ;;  %v4487_v51 = vld [vmem:[#allocation6 + $0x158] sm:$0xff]  }
 0x2c2   :  { %v1956_v43 = vrot.slane %v1955_v53, 2 }
 0x2c4   :  { %v1957_v33 = vadd.f32 %v1956_v43, %v1955_v53  ;;  %v4486_v53 = vld [vmem:[#allocation6 + $0x190] sm:$0xff]   ;;  %v4489_v43 = vld [vmem:[#allocation6 + $0x1d8] sm:$0xff]  }
 0x2c6   :  { %v1958_v55 = vrot.slane %v1957_v33, 1 }
 0x2c8   :  { %v1959_v31 = vadd.f32 %v1958_v55, %v1957_v33  ;;  %v4488_v33 = vld [vmem:[#allocation6 + $0x118] sm:$0xff]   ;;  %v4491_v55 = vld [vmem:[#allocation6 + $0x160] sm:$0xff]  }
 0x2ca   :  { %v1960_v42 = vmul.f32 0.03125, %v1959_v31  ;;  %v4490_v31 = vld [vmem:[#allocation6 + $0x198] sm:$0xff]  }
 0x2cc   :  { %v1961_v57 = vadd.f32 1e-05, %v1960_v42  ;;  %v4493_v42 = vld [vmem:[#allocation6 + $0x1e0] sm:$0xff]  }
 0x2ce   :  { %4583 = vrsqrt.f32 %v1961_v57  ;;  %v4492_v57 = vld [vmem:[#allocation6 + $0x120] sm:$0xff]  }
 0x2d8   :  { %v4584_v30 = vpop.eup %4583 }
 0x2d9   :  { %v1963_v17 = vmul.f32 %v4584_v30, %v1931_v49  ;;  %v4497_v49 = vld [vmem:[#allocation6 + $0x1e8] sm:$0xff]  }
 0x2da   :  { %v4496_v30 = vld [vmem:[#allocation6 + $0x128] sm:$0xff]  }
 0x2db   :  { %v1967_v18 = vrot.slane %v1963_v17, %v4818_v54  ;;  %v4499_v17 = vld [vmem:[#allocation6 + $0x170] sm:$0xff]  }
 0x2dd   :  { %v1971_v60 = vmul.f32 %v1967_v18, %v1946_v41  ;;  %v1968_v61 = vmul.f32 %v1967_v18, %v1943_v34  ;;  %v1970_v62 = vmul.f32 %v1967_v18, %v1945_v37  ;;  %v1969_v63 = vmul.f32 %v1967_v18, %v1944_v36  ;;  %v4479_v34 = vld [vmem:[#allocation6 + $0x148] sm:$0xff]   ;;  %v4501_v18 = vld [vmem:[#allocation6 + $0x1f0] sm:$0xff]  }
 0x2df   :  { %v1981_v1 = vadd.f32 %v3772_v59, %v1971_v60  ;;  %v1978_v48 = vadd.f32 %v3772_v59, %v1968_v61  ;;  %v1980_v2 = vadd.f32 %v3772_v59, %v1970_v62  ;;  %v1979_v4 = vadd.f32 %v3772_v59, %v1969_v63  ;;  %v4500_v59 = vld [vmem:[#allocation6 + $0x130] sm:$0xff]   ;;  %v4503_v60 = vld [vmem:[#allocation6 + $0x178] sm:$0xff]  }
 0x2e0   :  { %v4502_v61 = vld [vmem:[#allocation6 + $0x1b0] sm:$0xff]   ;;  %v4505_v62 = vld [vmem:[#allocation6 + $0x1f8] sm:$0xff]  }
 0x2e1   :  { %v1986_v6 = vcombine.low %v1978_v48, %v1980_v2  ;;  %v1987_v7 = vcombine.high %v1978_v48, %v1980_v2  ;;  %v2036_v14 = vcombine.low %v1979_v4, %v1981_v1  ;;  %v2037_v3 = vcombine.high %v1979_v4, %v1981_v1  ;;  %v4504_v63 = vld [vmem:[#allocation6 + $0x138] sm:$0xff]   ;;  %v4509_v2 = vld [vmem:[#allocation6 + $0x2c0] sm:$0xff]  }
 0x2e2   :  { %v4506_v1 = vld [vmem:[#allocation6 + $0x1b8] sm:$0xff]   ;;  %v4508_v4 = vld [vmem:[#allocation6 + $0x200] sm:$0xff]  }
 0x2e3   :  { %v1994_v8 = vrot.slane %v1986_v6, %v1993_v0  ;;  %v2001_v9 = vrot.slane %v1987_v7, %v1993_v0  ;;  %v2044_v10 = vrot.slane %v2036_v14, %v1993_v0  ;;  %v2051_v11 = vrot.slane %v2037_v3, %v1993_v0  ;;  %v4511_v14 = vld [vmem:[#allocation6 + $0x248] sm:$0xff]  }
 0x2e5   :  { %v2002_v12 = vcombine.high %v1994_v8, %v1994_v8  ;;  %v2010_v13 = vrot.slane %v1994_v8, %v1993_v0  ;;  %v2003_v22 = vcombine.high %v2001_v9, %v2001_v9  ;;  %v4964_v23 = vrot.slane %v2001_v9, %v1993_v0  ;;  %v4510_v8 = vld [vmem:[#allocation6 + $0x280] sm:$0xff]  }
 0x2e6   :  { %v2052_v24 = vcombine.high %v2044_v10, %v2044_v10  ;;  %v4966_v25 = vrot.slane %v2044_v10, %v1993_v0  ;;  %v4968_v52 = vrot.slane %v2051_v11, %v1993_v0  ;;  %v2053_v28 = vcombine.high %v2051_v11, %v2051_v11  ;;  %v4513_v10 = vld [vmem:[#allocation6 + $0x2c8] sm:$0xff]  }
 0x2e7   :  { %v2024_v26 = vrot.slane %v2002_v12, %v1993_v0  ;;  %v2031_v27 = vrot.slane %v2003_v22, %v1993_v0  ;;  %v2032_v29 = vcombine.high %v2010_v13, %v2010_v13  ;;  %v2102_v39 = vpack.c.bf16 %v2010_v13, %v2010_v13  ;;  %v4512_v12 = vld [vmem:[#allocation6 + $0x208] sm:$0xff]   ;;  %v4515_v13 = vld [vmem:[#allocation6 + $0x250] sm:$0xff]  }
 0x2e8   :  { %v4970_v15 = vrot.slane %v2052_v24, %v1993_v0  ;;  %v4972_v36 = vrot.slane %v2053_v28, %v1993_v0  ;;  %v4507_v0 = vld [vmem:[#allocation6 + $0x240] sm:$0xff]   ;;  %v2033_v48 = vcombine.high %v4964_v23, %v4964_v23  ;;  %v2106_v7 = vpack.c.bf16 %v4964_v23, %v4964_v23  ;;  %v4514_v22 = vld [vmem:[#allocation6 + $0x288] sm:$0xff]   ;;  %v4517_v23 = vld [vmem:[#allocation6 + $0x2d0] sm:$0xff]  }
 0x2e9   :  { %v2103_v38 = vpack.c.bf16 %v2024_v26, %v2024_v26  ;;  %v2034_v19 = vcombine.high %v2024_v26, %v2024_v26  ;;  %v2035_v20 = vcombine.high %v2031_v27, %v2031_v27  ;;  %v2107_v37 = vpack.c.bf16 %v2031_v27, %v2031_v27  ;;  %v4516_v24 = vld [vmem:[#allocation6 + $0x210] sm:$0xff]   ;;  %v4519_v26 = vld [vmem:[#allocation6 + $0x258] sm:$0xff]  }
 0x2ea   :  { %v2104_v41 = vpack.c.bf16 %v2032_v29, %v2032_v29  ;;  %v2084_v6 = vcombine.high %v4970_v15, %v4970_v15  ;;  %v2111_v3 = vpack.c.bf16 %v4970_v15, %v4970_v15  ;;  %v2108_v9 = vpack.c.bf16 %v2033_v48, %v2033_v48  ;;  %v4518_v27 = vld [vmem:[#allocation6 + $0x290] sm:$0xff]   ;;  %v4521_v28 = vld [vmem:[#allocation6 + $0x2d8] sm:$0xff]   ;;  %v4523_v15 = vld [vmem:[#allocation6 + $0x260] sm:$0xff]  }
 0x2eb   :  { %3181 = vmatprep.mubr.bf16.mxu0 %v2103_v38  ;;  %v2105_v21 = vpack.c.bf16 %v2034_v19, %v2034_v19  ;;  %v2109_v35 = vpack.c.bf16 %v2035_v20, %v2035_v20  ;;  %v4520_v29 = vld [vmem:[#allocation6 + $0x218] sm:$0xff]   ;;  %v4524_v19 = vld [vmem:[#allocation6 + $0x220] sm:$0xff]   ;;  %v4559_v48 = vld [vmem:[#allocation6 + $0x368] sm:$0xff]  }
 0x2ec   :  { %3182 = vmatmul.mubr.bf16.vlgmr.msra.gmra.mrb[32].mxu0 %v2102_v39  ;;  %v2113_v11 = vpack.c.bf16 %v2084_v6, %v2084_v6  ;;  %v4522_v38 = vld [vmem:[#allocation6 + $0x298] sm:$0xff]   ;;  %v4527_v39 = vld [vmem:[#allocation6 + $0x268] sm:$0xff]   ;;  %v4526_v20 = vld [vmem:[#allocation6 + $0x2a0] sm:$0xff]  }
 0x2ed   :  { %4153 = vmatpush3.bf16.msra.mxu0 %v4476_v16  ;;  %3221 = vmatprep.mubr.bf16.mxu1 %v2105_v21  ;;  %v4525_v16 = vld [vmem:[#allocation6 + $0x2e0] sm:$0xff]   ;;  %v4529_v21 = vld [vmem:[#allocation6 + $0x2e8] sm:$0xff]  }
 0x2ee   :  { %3261 = vmatprep.mubr.bf16.mxu0 %v2107_v37  ;;  %3222 = vmatmul.mubr.bf16.vlgmr.msra.gmra.mrb[32].mxu1 %v2104_v41  ;;  %v4530_v37 = vld [vmem:[#allocation6 + $0x2a8] sm:$0xff]   ;;  %v4533_v41 = vld [vmem:[#allocation6 + $0x2f0] sm:$0xff]  }
 0x2ef   :  { %4175 = vmatpush3.bf16.msra.mxu1 %v4478_v32  ;;  %4154 = vmatprep.subr.bf16.mxu0 %v4479_v34  ;;  %v4528_v32 = vld [vmem:[#allocation6 + $0x228] sm:$0xff]   ;;  %v4531_v34 = vld [vmem:[#allocation6 + $0x270] sm:$0xff]  }
 0x2f0   :  { %3301 = vmatprep.mubr.bf16.mxu1 %v2109_v35  ;;  %4176 = vmatprep.subr.bf16.mxu1 %v4481_v45  ;;  %v4532_v45 = vld [vmem:[#allocation6 + $0x230] sm:$0xff]   ;;  %v4560_v6 = vld [vmem:[#allocation6 + $0x328] sm:$0xff]  }
 0x2f1   :  { %4155 = vmatpush3.bf16.msra.mxu0 %v4480_v46  ;;  %v4535_v46 = vld [vmem:[#allocation6 + $0x278] sm:$0xff]   ;;  %v4534_v35 = vld [vmem:[#allocation6 + $0x2b0] sm:$0xff]  }
 0x2f2   :  { %4156 = vmatprep.subr.bf16.mxu0 %v4483_v47  ;;  %v4537_v47 = vld [vmem:[#allocation6 + $0x2f8] sm:$0xff]  }
 0x2f3   :  { %4177 = vmatpush3.bf16.msra.mxu1 %v4482_v44  ;;  %v4536_v44 = vld [vmem:[#allocation6 + $0x238] sm:$0xff]  }
 0x2f4   :  { %4178 = vmatprep.subr.bf16.mxu1 %v4485_v50  ;;  %v4539_v50 = vld [vmem:[#allocation6 + $0x340] sm:$0xff]  }
 0x2f5   :  { %4157 = vmatpush3.bf16.msra.mxu0 %v4484_v40  ;;  %v4538_v40 = vld [vmem:[#allocation6 + $0x2b8] sm:$0xff]  }
 0x2f6   :  { %4158 = vmatprep.subr.bf16.mxu0 %v4487_v51  ;;  %v2082_v51 = vcombine.high %v4966_v25, %v4966_v25 }
 0x2f7   :  { %4179 = vmatpush3.bf16.msra.mxu1 %v4486_v53  ;;  %v4541_v53 = vld [vmem:[#allocation6 + $0x3c0] sm:$0xff]  }
 0x2f8   :  { %4180 = vmatprep.subr.bf16.mxu1 %v4489_v43  ;;  %v4540_v43 = vld [vmem:[#allocation6 + $0x300] sm:$0xff]  }
 0x2f9   :  { %4159 = vmatpush3.bf16.msra.mxu0 %v4488_v33  ;;  %v2085_v33 = vcombine.high %v4972_v36, %v4972_v36 }
 0x2fa   :  { %4160 = vmatprep.subr.bf16.mxu0 %v4491_v55  ;;  %v2110_v55 = vpack.c.bf16 %v4966_v25, %v4966_v25  ;;  %v4546_v25 = vld [vmem:[#allocation6 + $0x388] sm:$0xff]  }
 0x2fb   :  { %4181 = vmatpush3.bf16.msra.mxu1 %v4490_v31  ;;  %v4543_v31 = vld [vmem:[#allocation6 + $0x348] sm:$0xff]  }
 0x2fc   :  { %4182 = vmatprep.subr.bf16.mxu1 %v4493_v42  ;;  %v2115_v42 = vpack.c.bf16 %v4972_v36, %v4972_v36  ;;  %v4551_v36 = vld [vmem:[#allocation6 + $0x358] sm:$0xff]  }
 0x2fd   :  { %4161 = vmatpush3.bf16.msra.mxu0 %v4492_v57  ;;  %v4542_v57 = vld [vmem:[#allocation6 + $0x380] sm:$0xff]  }
 0x2fe   :  { %4162 = vmatprep.subr.bf16.mxu0 %v4495_v58  ;;  %v2112_v58 = vpack.c.bf16 %v2082_v51, %v2082_v51 }
 0x2ff   :  { %4183 = vmatpush3.bf16.msra.mxu1 %v4494_v56  ;;  %v4545_v56 = vld [vmem:[#allocation6 + $0x3c8] sm:$0xff]  }
 0x300   :  { %4184 = vmatprep.subr.bf16.mxu1 %v4497_v49  ;;  %v2117_v49 = vpack.c.bf16 %v2085_v33, %v2085_v33 }
 0x301   :  { %4163 = vmatpush3.bf16.msra.mxu0 %v4496_v30  ;;  %v4544_v30 = vld [vmem:[#allocation6 + $0x308] sm:$0xff]  }
 0x302   :  { %4164 = vmatprep.subr.bf16.mxu0 %v4499_v17  ;;  %v4547_v17 = vld [vmem:[#allocation6 + $0x350] sm:$0xff]  }
 0x303   :  { %4185 = vmatpush3.bf16.msra.mxu1 %v4498_v5  ;;  %v4549_v5 = vld [vmem:[#allocation6 + $0x3d0] sm:$0xff]  }
 0x304   :  { %4186 = vmatprep.subr.bf16.mxu1 %v4501_v18  ;;  %v4548_v18 = vld [vmem:[#allocation6 + $0x310] sm:$0xff]  }
 0x305   :  { %4165 = vmatpush3.bf16.msra.mxu0 %v4500_v59  ;;  %v4550_v59 = vld [vmem:[#allocation6 + $0x390] sm:$0xff]  }
 0x306   :  { %4166 = vmatprep.subr.bf16.mxu0 %v4503_v60  ;;  %v4553_v60 = vld [vmem:[#allocation6 + $0x3d8] sm:$0xff]  }
 0x307   :  { %4187 = vmatpush3.bf16.msra.mxu1 %v4502_v61  ;;  %v4552_v61 = vld [vmem:[#allocation6 + $0x318] sm:$0xff]  }
 0x308   :  { %4188 = vmatprep.subr.bf16.mxu1 %v4505_v62  ;;  %v4555_v62 = vld [vmem:[#allocation6 + $0x360] sm:$0xff]  }
 0x309   :  { %4167 = vmatpush3.bf16.msra.mxu0 %v4504_v63  ;;  %v4554_v63 = vld [vmem:[#allocation6 + $0x398] sm:$0xff]  }
 0x30a   :  { %4196 = vmatprep.subr.bf16.mxu0 %v4507_v0  ;;  %v4557_v0 = vld [vmem:[#allocation6 + $0x3e0] sm:$0xff]  }
 0x30b   :  { %4189 = vmatpush3.bf16.msra.mxu1 %v4506_v1  ;;  %v4556_v1 = vld [vmem:[#allocation6 + $0x320] sm:$0xff]  }
 0x30c   :  { %3262 = vmatmul.mubr.bf16.vlgmr.msra.gmra.mrb[36].mxu0 %v2106_v7  ;;  %4218 = vmatprep.subr.bf16.mxu1 %v4509_v2  ;;  %v4558_v2 = vld [vmem:[#allocation6 + $0x3a0] sm:$0xff]   ;;  %v4563_v7 = vld [vmem:[#allocation6 + $0x370] sm:$0xff]  }
 0x30d   :  { %4197 = vmatpush3.bf16.msra.mxu0 %v4508_v4  ;;  %3341 = vmatprep.mubr.bf16.mxu0 %v2111_v3  ;;  %v4561_v4 = vld [vmem:[#allocation6 + $0x3e8] sm:$0xff]   ;;  %v4565_v3 = vld [vmem:[#allocation6 + $0x3f0] sm:$0xff]  }
 0x30e   :  { %3302 = vmatmul.mubr.bf16.vlgmr.msra.gmra.mrb[36].mxu1 %v2108_v9  ;;  %4198 = vmatprep.subr.bf16.mxu0 %v4511_v14  ;;  %v4562_v14 = vld [vmem:[#allocation6 + $0x3a8] sm:$0xff]   ;;  %v4567_v9 = vld [vmem:[#allocation6 + $0x378] sm:$0xff]  }
 0x30f   :  { %4219 = vmatpush3.bf16.msra.mxu1 %v4510_v8  ;;  %3381 = vmatprep.mubr.bf16.mxu1 %v2113_v11  ;;  %v4564_v8 = vld [vmem:[#allocation6 + $0x330] sm:$0xff]   ;;  %v4569_v11 = vld [vmem:[#allocation6 + $0x3f8] sm:$0xff]  }
 0x310   :  { %4220 = vmatprep.subr.bf16.mxu1 %v4513_v10  ;;  %v4566_v10 = vld [vmem:[#allocation6 + $0x3b0] sm:$0xff]  }
 0x311   :  { %4199 = vmatpush3.bf16.msra.mxu0 %v4512_v12  ;;  %v4568_v12 = vld [vmem:[#allocation6 + $0x338] sm:$0xff]  }
 0x312   :  { %4200 = vmatprep.subr.bf16.mxu0 %v4515_v13  ;;  %v4570_v13 = vld [vmem:[#allocation6 + $0x3b8] sm:$0xff]  }
 0x313   :  { %4221 = vmatpush3.bf16.msra.mxu1 %v4514_v22  ;;  %v2083_v22 = vcombine.high %v4968_v52, %v4968_v52 }
 0x314   :  { %4222 = vmatprep.subr.bf16.mxu1 %v4517_v23  ;;  %v2114_v23 = vpack.c.bf16 %v4968_v52, %v4968_v52 }
 0x315   :  { %4201 = vmatpush3.bf16.msra.mxu0 %v4516_v24  ;;  %v2116_v24 = vpack.c.bf16 %v2083_v22, %v2083_v22 }
 0x316   :  { %4202 = vmatprep.subr.bf16.mxu0 %v4519_v26 }
 0x317   :  { %4223 = vmatpush3.bf16.msra.mxu1 %v4518_v27  ;;  %v3773_v27 = vld [vmem:[%s5064_s9] ss:$0 sm:$0xff] }
 0x318   :  { %4224 = vmatprep.subr.bf16.mxu1 %v4521_v28 }
 0x319   :  { %4203 = vmatpush3.bf16.msra.mxu0 %v4520_v29 }
 0x31a   :  { %4204 = vmatprep.subr.bf16.mxu0 %v4523_v15 }
 0x31b   :  { %4225 = vmatpush3.bf16.msra.mxu1 %v4522_v38 }
 0x31c   :  { %4226 = vmatprep.subr.bf16.mxu1 %v4525_v16 }
 0x31d   :  { %4205 = vmatpush3.bf16.msra.mxu0 %v4524_v19 }
 0x31e   :  { %4206 = vmatprep.subr.bf16.mxu0 %v4527_v39 }
 0x31f   :  { %4227 = vmatpush3.bf16.msra.mxu1 %v4526_v20 }
 0x320   :  { %4228 = vmatprep.subr.bf16.mxu1 %v4529_v21 }
 0x321   :  { %4207 = vmatpush3.bf16.msra.mxu0 %v4528_v32 }
 0x322   :  { %4208 = vmatprep.subr.bf16.mxu0 %v4531_v34  ;;  %v4571_v34 = vld [vmem:[%s5067_s12] sm:$0xff]  }
 0x323   :  { %4229 = vmatpush3.bf16.msra.mxu1 %v4530_v37  ;;  %v4689_v37 = vmov 0.0  }
 0x324   :  { %4230 = vmatprep.subr.bf16.mxu1 %v4533_v41  ;;  %v4572_v41 = vld [vmem:[%s5067_s12 + $0x8] sm:$0xff]  }
 0x325   :  { %4209 = vmatpush3.bf16.msra.mxu0 %v4532_v45  ;;  %v4573_v45 = vld [vmem:[%s5067_s12 + $0x10] sm:$0xff]  }
 0x326   :  { %4210 = vmatprep.subr.bf16.mxu0 %v4535_v46  ;;  %v4574_v46 = vld [vmem:[%s5067_s12 + $0x18] sm:$0xff]  }
 0x327   :  { %4231 = vmatpush3.bf16.msra.mxu1 %v4534_v35  ;;  %v4575_v35 = vld [vmem:[%s5067_s12 + $0x20] sm:$0xff]  }
 0x328   :  { %4232 = vmatprep.subr.bf16.mxu1 %v4537_v47 }
 0x329   :  { %4211 = vmatpush3.bf16.msra.mxu0 %v4536_v44 }
 0x32a   :  { %4240 = vmatprep.subr.bf16.mxu0 %v4539_v50  ;;  %v4576_v50 = vld [vmem:[%s5067_s12 + $0x28] sm:$0xff]  }
 0x32b   :  { %4233 = vmatpush3.bf16.msra.mxu1 %v4538_v40 }
 0x32c   :  { %3342 = vmatmul.mubr.bf16.vlgmr.msra.gmra.mrb[40].mxu0 %v2110_v55  ;;  %4262 = vmatprep.subr.bf16.mxu1 %v4541_v53 }
 0x32d   :  { %4241 = vmatpush3.bf16.msra.mxu0 %v4540_v43  ;;  %3421 = vmatprep.mubr.bf16.mxu0 %v2115_v42 }
 0x32e   :  { %3382 = vmatmul.mubr.bf16.vlgmr.msra.gmra.mrb[40].mxu1 %v2112_v58  ;;  %4242 = vmatprep.subr.bf16.mxu0 %v4543_v31  ;;  %v4577_v58 = vld [vmem:[%s5067_s12 + $0x30] sm:$0xff]  }
 0x32f   :  { %4263 = vmatpush3.bf16.msra.mxu1 %v4542_v57  ;;  %3461 = vmatprep.mubr.bf16.mxu1 %v2117_v49  ;;  %v4578_v49 = vld [vmem:[%s5067_s12 + $0x38] sm:$0xff]  }
 0x330   :  { %4264 = vmatprep.subr.bf16.mxu1 %v4545_v56 }
 0x331   :  { %4243 = vmatpush3.bf16.msra.mxu0 %v4544_v30 }
 0x332   :  { %4244 = vmatprep.subr.bf16.mxu0 %v4547_v17 }
 0x333   :  { %4265 = vmatpush3.bf16.msra.mxu1 %v4546_v25 }
 0x334   :  { %4266 = vmatprep.subr.bf16.mxu1 %v4549_v5 }
 0x335   :  { %4245 = vmatpush3.bf16.msra.mxu0 %v4548_v18 }
 0x336   :  { %4246 = vmatprep.subr.bf16.mxu0 %v4551_v36 }
 0x337   :  { %4267 = vmatpush3.bf16.msra.mxu1 %v4550_v59 }
 0x338   :  { %4268 = vmatprep.subr.bf16.mxu1 %v4553_v60 }
 0x339   :  { %4247 = vmatpush3.bf16.msra.mxu0 %v4552_v61 }
 0x33a   :  { %4248 = vmatprep.subr.bf16.mxu0 %v4555_v62 }
 0x33b   :  { %4269 = vmatpush3.bf16.msra.mxu1 %v4554_v63 }
 0x33c   :  { %4270 = vmatprep.subr.bf16.mxu1 %v4557_v0 }
 0x33d   :  { %4249 = vmatpush3.bf16.msra.mxu0 %v4556_v1 }
 0x33e   :  { %4250 = vmatprep.subr.bf16.mxu0 %v4559_v48 }
 0x33f   :  { %4271 = vmatpush3.bf16.msra.mxu1 %v4558_v2 }
 0x340   :  { %4272 = vmatprep.subr.bf16.mxu1 %v4561_v4 }
 0x341   :  { %4251 = vmatpush3.bf16.msra.mxu0 %v4560_v6 }
 0x342   :  { %4252 = vmatprep.subr.bf16.mxu0 %v4563_v7 }
 0x343   :  { %4273 = vmatpush3.bf16.msra.mxu1 %v4562_v14 }
 0x344   :  { %4274 = vmatprep.subr.bf16.mxu1 %v4565_v3 }
 0x345   :  { %4253 = vmatpush3.bf16.msra.mxu0 %v4564_v8 }
 0x346   :  { %4254 = vmatprep.subr.bf16.mxu0 %v4567_v9 }
 0x347   :  { %4275 = vmatpush3.bf16.msra.mxu1 %v4566_v10 }
 0x348   :  { %4276 = vmatprep.subr.bf16.mxu1 %v4569_v11 }
 0x349   :  { %4255 = vmatpush3.bf16.msra.mxu0 %v4568_v12 }
 0x34a   :  { %4293 = vmatprep.subr.bf16.mxu0 %v4689_v37 }
 0x34b   :  { %4277 = vmatpush3.bf16.msra.mxu1 %v4570_v13 }
 0x34c   :  { %3422 = vmatmul.mubr.bf16.vlgmr.msra.gmra.mrb[44].mxu0 %v2114_v23 }
 0x34d   :  { %4294 = vmatpush3.bf16.msra.mxu0 %v4571_v34  ;;  %4309 = vmatprep.mubr.msk.bf16.mxu0 %vm4690_vm8, %v4689_v37 }
 0x34e   :  { %3462 = vmatmul.mubr.bf16.vlgmr.msra.gmra.mrb[44].mxu1 %v2116_v24  ;;  %4295 = vmatprep.subr.bf16.mxu0 %v4689_v37 }
 0x351   :  { %4296 = vmatpush3.bf16.msra.mxu0 %v4572_v41  ;;  %v3470_v41 = vld [vmem:[%s5065_s10] sm:$0x1] }
 0x352   :  { %4297 = vmatprep.subr.bf16.mxu0 %v4689_v37 }
 0x355   :  { %4298 = vmatpush3.bf16.msra.mxu0 %v4573_v45 }
 0x356   :  { %4299 = vmatprep.subr.bf16.mxu0 %v4689_v37 }
 0x359   :  { %4300 = vmatpush3.bf16.msra.mxu0 %v4574_v46 }
 0x35a   :  { %4301 = vmatprep.subr.bf16.mxu0 %v4689_v37 }
 0x35d   :  { %4302 = vmatpush3.bf16.msra.mxu0 %v4575_v35 }
 0x35e   :  { %4303 = vmatprep.subr.bf16.mxu0 %v4689_v37 }
 0x361   :  { %4304 = vmatpush3.bf16.msra.mxu0 %v4576_v50 }
 0x362   :  { %4305 = vmatprep.subr.bf16.mxu0 %v4689_v37 }
 0x365   :  { %4306 = vmatpush3.bf16.msra.mxu0 %v4577_v58 }
 0x366   :  { %4307 = vmatprep.subr.bf16.mxu0 %v4689_v37 }
 0x369   :  { %4308 = vmatpush3.bf16.msra.mxu0 %v4578_v49 }
 0x3bf   :  { %v4124_v26 = vpop.f32.mrb[32].mxu0 }
 0x3c0   :  { %v4125_v28 = vpop.f32.mrb[33].mxu0 }
 0x3c1   :  { %v4126_v29 = vadd.f32 %v4125_v28, %v4124_v26  ;;  %v4127_v15 = vpop.f32.mrb[34].mxu0  ;;  %v4146_v38 = vpop.f32.mrb[32].mxu1 }
 0x3c2   :  { %v4128_v16 = vpop.f32.mrb[35].mxu0  ;;  %v4147_v19 = vpop.f32.mrb[33].mxu1 }
 0x3c3   :  { %v3184_v39 = vadd.f32 %v4126_v29, %v3773_v27  ;;  %v4148_v20 = vadd.f32 %v4147_v19, %v4146_v38  ;;  %v4149_v21 = vpop.f32.mrb[34].mxu1 }
 0x3c4   :  { %v4150_v32 = vpop.f32.mrb[35].mxu1 }
 0x3c5   :  { %v3224_v52 = vadd.f32 %v4148_v20, %v3184_v39 }
 0x3df   :  { %v4168_v47 = vpop.f32.mrb[36].mxu0 }
 0x3e0   :  { %v4169_v44 = vpop.f32.mrb[37].mxu0 }
 0x3e1   :  { %v4170_v40 = vadd.f32 %v4169_v44, %v4168_v47  ;;  %v4171_v51 = vpop.f32.mrb[38].mxu0  ;;  %v4190_v53 = vpop.f32.mrb[36].mxu1  ;;  %v3902_v47 = vld [vmem:[%s5066_s11] ss:$0 sm:$0xff] }
 0x3e2   :  { %v4172_v43 = vpop.f32.mrb[39].mxu0  ;;  %v4191_v33 = vpop.f32.mrb[37].mxu1 }
 0x3e3   :  { %v3264_v55 = vadd.f32 %v4170_v40, %v3224_v52  ;;  %v4192_v31 = vadd.f32 %v4191_v33, %v4190_v53  ;;  %v4193_v42 = vpop.f32.mrb[38].mxu1 }
 0x3e4   :  { %v4194_v57 = vpop.f32.mrb[39].mxu1 }
 0x3e5   :  { %v3304_v56 = vadd.f32 %v4192_v31, %v3264_v55 }
 0x3ff   :  { %v4212_v30 = vpop.f32.mrb[40].mxu0 }
 0x400   :  { %v4213_v17 = vpop.f32.mrb[41].mxu0 }
 0x401   :  { %v4214_v25 = vadd.f32 %v4213_v17, %v4212_v30  ;;  %v4215_v5 = vpop.f32.mrb[42].mxu0  ;;  %v4234_v18 = vpop.f32.mrb[40].mxu1 }
 0x402   :  { %v4216_v36 = vpop.f32.mrb[43].mxu0  ;;  %v4235_v59 = vpop.f32.mrb[41].mxu1 }
 0x403   :  { %v3344_v60 = vadd.f32 %v4214_v25, %v3304_v56  ;;  %v4236_v61 = vadd.f32 %v4235_v59, %v4234_v18  ;;  %v4237_v62 = vpop.f32.mrb[42].mxu1 }
 0x404   :  { %v4238_v63 = vpop.f32.mrb[43].mxu1 }
 0x405   :  { %v3384_v0 = vadd.f32 %v4236_v61, %v3344_v60 }
 0x41f   :  { %v4256_v1 = vpop.f32.mrb[44].mxu0 }
 0x420   :  { %v4257_v48 = vpop.f32.mrb[45].mxu0 }
 0x421   :  { %v4258_v2 = vadd.f32 %v4257_v48, %v4256_v1  ;;  %v4259_v4 = vpop.f32.mrb[46].mxu0  ;;  %v4278_v6 = vpop.f32.mrb[44].mxu1 }
 0x422   :  { %v4260_v7 = vpop.f32.mrb[47].mxu0  ;;  %v4279_v14 = vpop.f32.mrb[45].mxu1 }
 0x423   :  { %v3424_v3 = vadd.f32 %v4258_v2, %v3384_v0  ;;  %v4280_v8 = vadd.f32 %v4279_v14, %v4278_v6  ;;  %v4281_v9 = vpop.f32.mrb[46].mxu1 }
 0x424   :  { %v4282_v10 = vpop.f32.mrb[47].mxu1 }
 0x425   :  { %v3464_v11 = vadd.f32 %v4280_v8, %v3424_v3 }
 0x427   :  { %v3469_v12 = vmax.f32 %v3464_v11, 0.0 }
 0x429   :  { %v3473_v13 = vsel %vm3472_vm9, %v3469_v12, 0.0 }
 0x42a   :  { %v3474_v22 = vrot.slane %v3473_v13, 4 }
 0x42c   :  { %v3475_v23 = vadd.f32 %v3474_v22, %v3473_v13 }
 0x42e   :  { %v3476_v24 = vrot.slane %v3475_v23, 2 }
 0x430   :  { %v3477_v26 = vadd.f32 %v3476_v24, %v3475_v23 }
 0x432   :  { %v3478_v27 = vrot.slane %v3477_v26, 1 }
 0x434   :  { %v3479_v28 = vadd.f32 %v3478_v27, %v3477_v26 }
 0x436   :  { %v3480_v29 = vmul.f32 0.5, %v3479_v28 }
 0x438   :  { %v3481_v15 = vsub.f32 %v3469_v12, %v3480_v29 }
 0x43a   :  { %v3482_v38 = vmul.f32 %v3481_v15, %v3481_v15 }
 0x43c   :  { %v3483_v16 = vsel %vm3472_vm9, %v3482_v38, 0.0 }
 0x43d   :  { %v3484_v19 = vrot.slane %v3483_v16, 4 }
 0x43f   :  { %v3485_v39 = vadd.f32 %v3484_v19, %v3483_v16 }
 0x441   :  { %v3486_v20 = vrot.slane %v3485_v39, 2 }
 0x443   :  { %v3487_v21 = vadd.f32 %v3486_v20, %v3485_v39 }
 0x445   :  { %v3488_v32 = vrot.slane %v3487_v21, 1 }
 0x447   :  { %v3489_v52 = vadd.f32 %v3488_v32, %v3487_v21 }
 0x449   :  { %v3490_v34 = vmul.f32 0.5, %v3489_v52 }
 0x44b   :  { %v3491_v37 = vadd.f32 1e-05, %v3490_v34 }
 0x44d   :  { %4585 = vrsqrt.f32 %v3491_v37 }
 0x457   :  { %v4586_v45 = vpop.eup %4585 }
 0x458   :  { %v3493_v46 = vmul.f32 %v4586_v45, %v3470_v41 }
 0x45a   :  { %v3497_v35 = vrot.slane %v3493_v46, %v4818_v54 }
 0x45c   :  { %v3498_v44 = vmul.f32 %v3497_v35, %v3481_v15 }
 0x45e   :  { %v3505_v50 = vadd.f32 %v3902_v47, %v3498_v44 }
 0x460   :  { %3618 = vst [vmem:[#allocation9] sm:$0x3] %v3505_v50  ;;  %v3506_v40 = vpack.c.bf16 %v3505_v50, %v3505_v50 }
 0x462   :  { %4310 = vmatmul.mubr.bf16.vlgmr.msra.gmra.mrb[48].mxu0 %v3506_v40 }
 0x463   :  { %4642 = shalt.err (!%p4639_p6)
}
 0x464   :  { %s4643_s6 = scalar_lea.hbm %s5070_s15, 32 }
 0x465   :  { %p4644_p7 = scmp.ne.s32.totalorder %s5070_s15, %s4643_s6  ;;  %p4647_p8 = scmp.lt.u32.totalorder %s4643_s6, %s5070_s15 }
 0x467   :  { %p4649_p9 = pnand %p4647_p8, %p4644_p7 }
 0x469   :  { %4652 = shalt.err (!%p4649_p9)
}
 0x46a   :  { %3639 = dma.vmem_to_hbm [thread:$0]  %s3637_s27, 32, %s5070_s15, [#allocation10]   ;;  %v3903_v54 = vld [vmem:[%s5068_s13] ss:$0 sm:$0xff] }
 0x46b   :  { %s4692_s29 = smov [#allocation8]  }
 0x46c   :  { %s3626_s18 = sshll.u32 %s4692_s29, 4  ;;  %s3627_s18 = int_to_ptr.vmem [resolvable:$true] %s3626_s18 }
 0x46d   :  { %s4653_s20 = scalar_lea.vmem %s3627_s18, 32  ;;  %p4658_p11 = scmp.lt.s32.totalorder %s3627_s18, %s3627_s18 }
 0x46e   :  { %p4654_p10 = scmp.ne.s32.totalorder %s3627_s18, %s4653_s20  ;;  %p4659_p12 = scmp.lt.s32.totalorder %s4653_s20, %s4653_s20 }
 0x470   :  { %p4660_p13 = por %p4659_p12, %p4658_p11 }
 0x472   :  { %p4661_p0 = pnand %p4660_p13, %p4654_p10 }
 0x535   :  { %v3612_v51 = vpop.f32.mrb[48].mxu0 }
 0x536   :  { %v3613_v53 = vadd.f32 %v3903_v54, %v3612_v51  ;;  %v4311_v43 = vpop.f32.mrb[49].mxu0 }
 0x537   :  { %v3615_v33 = vpop.f32.mrb[50].mxu0 }
 0x538   :  { %3619 = vst [vmem:[#allocation8] sm:$0x3] %v3613_v53  ;;  %v4312_v55 = vpop.f32.mrb[51].mxu0 }
 0x539   :  { %4664 = shalt.err (!%p4661_p0)
}
 0x53a   :  { %s4665_s13 = scalar_lea.hbm %s5069_s14, 32 }
 0x53b   :  { %p4666_p1 = scmp.ne.s32.totalorder %s5069_s14, %s4665_s13  ;;  %p4669_p2 = scmp.lt.u32.totalorder %s4665_s13, %s5069_s14 }
 0x53d   :  { %p4671_p3 = pnand %p4669_p2, %p4666_p1 }
 0x53f   :  { %4674 = shalt.err (!%p4671_p3)
}
 0x540   :  { %3629 = dma.vmem_to_hbm [thread:$0]  %s3627_s18, 32, %s5069_s14, [#allocation5]  }
 0x541   :  { %4679 = dma.done.wait [#allocation5], 32  }
 0x542   :  { %4680 = vsyncadd [#allocation5], 4294967264 }
 0x543   :  { %4681 = dma.done.wait [#allocation10], 32  }
 0x544   :  { %4682 = vsyncadd [#allocation10], 4294967264 }
 0x545   :  { %3646 = vsyncpa [#allocation4], 1 }
 0x546   :  { %3647 = vsyncpa [#allocation7], 1 }
 0x547   :  { %3648 = vsyncpa [#allocation5], 1 }
 0x548   :  { %3649 = vsyncpa [#allocation10], 1 }

</bundles_post_ra>
